<compile_context>
chip_gen: v7x
topology: tpu7x:2x2x1
jax: 0.10.0
libtpu: 0.0.40
codegen_flags: <defaults>
</compile_context>

<pallas_src>
import functools

import jax
import jax.numpy as jnp
import numpy as np
from jax import lax
from jax.experimental import pallas as pl
from jax.experimental.pallas import tpu as pltpu

HIDDEN = 128   # hidden_size (pre_net hardcodes 128 outputs in the module)
C_IN = 4       # pre_net hardcodes 4 input channels
C_OUT = 4      # out_proj hardcodes 4 output channels


def _fvae_decoder_kernel(x_ref, wpre_ref, bpre_ref, win_ref, bin_ref,
                         wrs_ref, brs_ref, wout_ref, bout_ref, o_ref,
                         *, n_layers, kernel_size, tile_t, halo, seq_len):
    H = HIDDEN
    pad = (kernel_size - 1) // 2
    te = tile_t + 2 * halo                       # haloed tile length (mult of 8)
    j = pl.program_id(1)

    # Haloed x window for this time tile (x was pre-padded by `halo` on the left
    # and up to a tile multiple + halo on the right by the wrapper).
    start = pl.multiple_of(j * tile_t, 128)
    x_win = x_ref[0, pl.ds(start, te), :].astype(jnp.bfloat16)        # (te, 4)

    # pre_net: 1x1 conv == channel matmul (bf16 operands, f32 accumulation).
    h = jnp.dot(x_win, wpre_ref[...],
                preferred_element_type=jnp.float32) + bpre_ref[...]   # (te, H)

    # Rows whose *global* position is outside [0, seq_len) must act as the
    # conv's zero padding at every layer.  Mask computed once (hoisted).
    row = lax.broadcasted_iota(jnp.int32, (te, 1), 0)
    gpos = row + (j * tile_t - halo)
    inseq = (gpos >= 0) & (gpos < seq_len)                            # (te, 1)
    h = jnp.where(inseq, h, 0.0)

    zrow = jnp.zeros((pad, H), jnp.float32) if pad > 0 else None
    out_acc = jnp.zeros((tile_t, H), jnp.float32)

    for i in range(n_layers):                    # small static unroll
        # in_layer: width-K conv, dilation=1, 'same' padding, fused over taps.
        hp = jnp.concatenate([zrow, h, zrow], axis=0) if pad > 0 else h
        h_ext = jnp.concatenate([hp[t:t + te] for t in range(kernel_size)],
                                axis=1)                               # (te, K*H)
        x_in = jnp.dot(h_ext.astype(jnp.bfloat16), win_ref[i],
                       preferred_element_type=jnp.float32) + bin_ref[i]

        # fused_add_tanh_sigmoid_multiply with zero conditioning (kept in f32).
        acts = jnp.tanh(x_in[:, :H]) * jax.nn.sigmoid(x_in[:, H:])
        acts_b = acts.astype(jnp.bfloat16)

        if i < n_layers - 1:
            rs = jnp.dot(acts_b, wrs_ref[i],
                         preferred_element_type=jnp.float32) + brs_ref[i]
            h = jnp.where(inseq, h + rs[:, :H], 0.0)                  # residual
            out_acc = out_acc + rs[halo:halo + tile_t, H:]            # skip
        else:
            # Last layer: res_skip conv only has H (skip) outputs; only the
            # interior rows of the tile are needed.
            rs = jnp.dot(acts_b[halo:halo + tile_t], wrs_ref[i][:, :H],
                         preferred_element_type=jnp.float32) + brs_ref[i][:, :H]
            out_acc = out_acc + rs

    # out_proj: 1x1 conv 128 -> 4, produced directly as (C_OUT, tile_t) so the
    # output store is lane-dense and already in NCT layout.
    y_t = lax.dot_general(wout_ref[...], out_acc.astype(jnp.bfloat16),
                          (((1,), (1,)), ((), ())),
                          preferred_element_type=jnp.float32)         # (4, tile_t)
    o_ref[0] = (y_t + bout_ref[...]).astype(o_ref.dtype)


def fvae_decoder_forward(x_nct, params, *, n_layers, kernel_size, max_tile_t=512):
    """x_nct: (B, 4, T) float32 -> (B, 4, T) float32 (matches the PyTorch module)."""
    (w_pre, b_pre, w_in, b_in, w_rs, b_rs, w_out, b_out) = params
    B, _, T = x_nct.shape
    L, K, H = n_layers, kernel_size, HIDDEN
    pad = (K - 1) // 2

    def rup(v, m):
        return ((v + m - 1) // m) * m

    halo = rup(L * pad, 4)                       # >= receptive-field halo, 2*halo % 8 == 0
    tile_t = min(max(128, (max_tile_t // 128) * 128), rup(T, 128))
    n_tiles = (T + tile_t - 1) // tile_t
    t_out = n_tiles * tile_t
    t_x = t_out + 2 * halo
    te = tile_t + 2 * halo

    # (B, 4, T) -> (B, T, 4), zero-padded by halo (left) and tile-round + halo (right).
    x_btc = jnp.transpose(x_nct, (0, 2, 1))
    x_pad = jnp.pad(x_btc, ((0, 0), (halo, t_x - halo - T), (0, 0)))

    # bf16 MXU operands (accumulation stays f32 in-kernel).
    w_pre_b = w_pre.astype(jnp.bfloat16)
    w_in_f = w_in.reshape(L, K * H, 2 * H).astype(jnp.bfloat16)   # fused-tap layout
    w_rs_b = w_rs.astype(jnp.bfloat16)
    w_out_b = w_out.astype(jnp.bfloat16)

    def const_spec(shape):
        return pl.BlockSpec(shape, lambda b, j, _n=len(shape): (0,) * _n)

    kernel = functools.partial(_fvae_decoder_kernel, n_layers=L, kernel_size=K,
                               tile_t=tile_t, halo=halo, seq_len=T)

    # VMEM budget: double-buffered resident inputs + haloed working set + headroom.
    # TODO(synk): weight inputs could be single-buffered (pl.Buffered(1)) on v7x.
    weight_bytes = 2 * (w_pre_b.size + w_in_f.size + w_rs_b.size + w_out_b.size)
    bias_bytes = 4 * (b_pre.size + b_in.size + b_rs.size + b_out.size)
    x_blk = 4 * t_x * C_IN
    o_blk = 4 * C_OUT * tile_t
    work = 4 * te * H * (K + 10)
    vmem_limit = int(min(48 << 20,
                         max(32 << 20,
                             2 * (weight_bytes + bias_bytes + x_blk + o_blk)
                             + work + (8 << 20))))

    y_pad = pl.pallas_call(
        kernel,
        out_shape=jax.ShapeDtypeStruct((B, C_OUT, t_out), x_nct.dtype),
        grid_spec=pltpu.PrefetchScalarGridSpec(
            num_scalar_prefetch=0,
            grid=(B, n_tiles),
            in_specs=[
                pl.BlockSpec((1, t_x, C_IN), lambda b, j: (b, 0, 0)),   # x (haloed)
                const_spec((C_IN, H)),                                  # w_pre
                const_spec((1, H)),                                     # b_pre
                const_spec((L, K * H, 2 * H)),                          # w_in (fused)
                const_spec((L, 1, 2 * H)),                              # b_in
                const_spec((L, H, 2 * H)),                              # w_rs
                const_spec((L, 1, 2 * H)),                              # b_rs
                const_spec((C_OUT, H)),                                 # w_out
                const_spec((C_OUT, 1)),                                 # b_out
            ],
            out_specs=pl.BlockSpec((1, C_OUT, tile_t), lambda b, j: (b, 0, j)),
        ),
        compiler_params=pltpu.CompilerParams(
            dimension_semantics=("parallel", "parallel"),
            vmem_limit_bytes=vmem_limit),
    )(x_pad, w_pre_b, b_pre, w_in_f, b_in, w_rs_b, b_rs, w_out_b, b_out)

    return y_pad[:, :, :T]                       # already NCT; drop tile padding


def init_params(key, n_layers, kernel_size):
    """Deterministic synthetic parameters. weight_norm is folded into the
    effective weights (identity reparameterization at inference)."""
    L, K, H = n_layers, kernel_size, HIDDEN
    ks = jax.random.split(key, 8)
    s = 0.1
    w_pre = jax.random.normal(ks[0], (C_IN, H), jnp.float32) * s
    b_pre = jax.random.normal(ks[1], (1, H), jnp.float32) * s
    w_in = jax.random.normal(ks[2], (L, K, H, 2 * H), jnp.float32) * s
    b_in = jax.random.normal(ks[3], (L, 1, 2 * H), jnp.float32) * s
    w_rs = jax.random.normal(ks[4], (L, H, 2 * H), jnp.float32) * s
    b_rs = jax.random.normal(ks[5], (L, 1, 2 * H), jnp.float32) * s
    # Last WN layer's res_skip conv only has H (skip) outputs.
    w_rs = w_rs.at[L - 1, :, H:].set(0.0)
    b_rs = b_rs.at[L - 1, :, H:].set(0.0)
    w_out = jax.random.normal(ks[6], (C_OUT, H), jnp.float32) * s
    b_out = jax.random.normal(ks[7], (C_OUT, 1), jnp.float32) * s
    return (w_pre, b_pre, w_in, b_in, w_rs, b_rs, w_out, b_out)


def reference_forward(x_nct, params, *, n_layers, kernel_size):
    """Pure-JAX f32 reference mirroring the PyTorch semantics."""
    (w_pre, b_pre, w_in, b_in, w_rs, b_rs, w_out, b_out) = params
    H, K = HIDDEN, kernel_size
    pad = (K - 1) // 2
    x = jnp.transpose(x_nct, (0, 2, 1))              # (B, T, 4)
    T = x.shape[1]
    h = x @ w_pre + b_pre
    out = jnp.zeros_like(h)
    for i in range(n_layers):
        hp = jnp.pad(h, ((0, 0), (pad, pad), (0, 0)))
        x_in = b_in[i]
        for j in range(K):
            x_in = x_in + hp[:, j:j + T, :] @ w_in[i, j]
        acts = jnp.tanh(x_in[..., :H]) * jax.nn.sigmoid(x_in[..., H:])
        if i < n_layers - 1:
            rs = acts @ w_rs[i] + b_rs[i]
            h = h + rs[..., :H]
            out = out + rs[..., H:]
        else:
            out = out + acts @ w_rs[i][:, :H] + b_rs[i][:, :H]
    y = out @ w_out.T + b_out[:, 0]
    return jnp.transpose(y, (0, 2, 1))


if __name__ == "__main__":
    # TODO(synk): p_dropout=0 / eval-mode dropout is identity; not emitted.
    n_layers = 2
    kernel_size = 3
    B, T = 2, 64

    key = jax.random.PRNGKey(0)
    kx, kp = jax.random.split(key)
    x = jax.random.normal(kx, (B, C_IN, T), jnp.float32)
    params = init_params(kp, n_layers, kernel_size)

    y = fvae_decoder_forward(x, params, n_layers=n_layers, kernel_size=kernel_size)
    y = jax.block_until_ready(y)

    y_ref = reference_forward(x, params, n_layers=n_layers, kernel_size=kernel_size)
    assert y.shape == (B, C_OUT, T)
    # bf16 MXU operands -> loosened tolerance vs. the f32 reference.
    np.testing.assert_allclose(np.asarray(y), np.asarray(y_ref), rtol=2e-2, atol=2e-2)
    print("KERNEL_OK")
</pallas_src>

<mosaic_0001>
module attributes {stable_mosaic.version = 11 : i64} {
  func.func @_fvae_decoder_kernel(%arg0: i32, %arg1: i32, %arg2: memref<1x136x4xf32, #tpu.memory_space<vmem>>, %arg3: memref<4x128xbf16, #tpu.memory_space<vmem>>, %arg4: memref<1x128xf32, #tpu.memory_space<vmem>>, %arg5: memref<2x384x256xbf16, #tpu.memory_space<vmem>>, %arg6: memref<2x1x256xf32, #tpu.memory_space<vmem>>, %arg7: memref<2x128x256xbf16, #tpu.memory_space<vmem>>, %arg8: memref<2x1x256xf32, #tpu.memory_space<vmem>>, %arg9: memref<4x128xbf16, #tpu.memory_space<vmem>>, %arg10: memref<4x1xf32, #tpu.memory_space<vmem>>, %arg11: memref<1x4x128xf32, #tpu.memory_space<vmem>>) attributes {dimension_semantics = [#tpu.dimension_semantics<parallel>, #tpu.dimension_semantics<parallel>], iteration_bounds = array<i64: 2, 1>, scalar_prefetch = 0 : i64, scratch_operands = 0 : i64, tpu.core_type = #tpu.core_type<tc>, window_params = [{transform_indices = @transform_0, window_bounds = array<i64: 1, 136, 4>}, {pipeline_mode = #tpu.pipeline_mode<synchronous>, transform_indices = @transform_1, window_bounds = array<i64: 4, 128>}, {pipeline_mode = #tpu.pipeline_mode<synchronous>, transform_indices = @transform_2, window_bounds = array<i64: 1, 128>}, {pipeline_mode = #tpu.pipeline_mode<synchronous>, transform_indices = @transform_3, window_bounds = array<i64: 2, 384, 256>}, {pipeline_mode = #tpu.pipeline_mode<synchronous>, transform_indices = @transform_4, window_bounds = array<i64: 2, 1, 256>}, {pipeline_mode = #tpu.pipeline_mode<synchronous>, transform_indices = @transform_5, window_bounds = array<i64: 2, 128, 256>}, {pipeline_mode = #tpu.pipeline_mode<synchronous>, transform_indices = @transform_6, window_bounds = array<i64: 2, 1, 256>}, {pipeline_mode = #tpu.pipeline_mode<synchronous>, transform_indices = @transform_7, window_bounds = array<i64: 4, 128>}, {pipeline_mode = #tpu.pipeline_mode<synchronous>, transform_indices = @transform_8, window_bounds = array<i64: 4, 1>}, {transform_indices = @transform_9, window_bounds = array<i64: 1, 4, 128>}]} {
    %c128_i32 = arith.constant 128 : i32
    %0 = arith.muli %arg1, %c128_i32 : i32
    %1 = tpu.assume_multiple %0, 128 : i32
    %c0 = arith.constant 0 : index
    %2 = arith.index_cast %1 : i32 to index
    %c0_0 = arith.constant 0 : index
    %3 = vector.load %arg2[%c0, %2, %c0_0] : memref<1x136x4xf32, #tpu.memory_space<vmem>>, vector<1x136x4xf32>
    %4 = vector.shape_cast %3 : vector<1x136x4xf32> to vector<136x4xf32>
    %5 = arith.truncf %4 : vector<136x4xf32> to vector<136x4xbf16>
    %c0_1 = arith.constant 0 : index
    %c0_2 = arith.constant 0 : index
    %6 = vector.load %arg3[%c0_1, %c0_2] : memref<4x128xbf16, #tpu.memory_space<vmem>>, vector<4x128xbf16>
    %cst = arith.constant dense<0.000000e+00> : vector<136x128xf32>
    %7 = tpu.matmul %5, %6, %cst {dimension_numbers = #tpu.dot_dimension_numbers<[1], [0], [0], [1], [0, 0, 1, 1], [], []>} : vector<136x4xbf16>, vector<4x128xbf16>, vector<136x128xf32> -> vector<136x128xf32>
    %c0_3 = arith.constant 0 : index
    %c0_4 = arith.constant 0 : index
    %8 = vector.load %arg4[%c0_3, %c0_4] : memref<1x128xf32, #tpu.memory_space<vmem>>, vector<1x128xf32>
    %9 = vector.broadcast %8 : vector<1x128xf32> to vector<136x128xf32>
    %10 = arith.addf %7, %9 : vector<136x128xf32>
    %11 = tpu.iota {dimensions = array<i32: 0>} : vector<136x1xi32>
    %c128_i32_5 = arith.constant 128 : i32
    %12 = arith.muli %arg1, %c128_i32_5 : i32
    %c4_i32 = arith.constant 4 : i32
    %13 = arith.subi %12, %c4_i32 : i32
    %14 = vector.broadcast %13 : i32 to vector<136x1xi32>
    %15 = arith.addi %11, %14 : vector<136x1xi32>
    %c0_i32 = arith.constant 0 : i32
    %16 = vector.broadcast %c0_i32 : i32 to vector<136x1xi32>
    %17 = arith.cmpi sge, %15, %16 : vector<136x1xi32>
    %c64_i32 = arith.constant 64 : i32
    %18 = vector.broadcast %c64_i32 : i32 to vector<136x1xi32>
    %19 = arith.cmpi slt, %15, %18 : vector<136x1xi32>
    %20 = arith.andi %17, %19 : vector<136x1xi1>
    %cst_6 = arith.constant 0.000000e+00 : f32
    %21 = vector.shape_cast %20 : vector<136x1xi1> to vector<136x1xi1>
    %22 = vector.broadcast %21 : vector<136x1xi1> to vector<136x128xi1>
    %23 = vector.broadcast %cst_6 : f32 to vector<136x128xf32>
    %24 = arith.select %22, %10, %23 : vector<136x128xi1>, vector<136x128xf32>
    %cst_7 = arith.constant 0.000000e+00 : f32
    %25 = vector.broadcast %cst_7 : f32 to vector<1x128xf32>
    %cst_8 = arith.constant 0.000000e+00 : f32
    %26 = vector.broadcast %cst_8 : f32 to vector<128x128xf32>
    %27 = tpu.concatenate %25, %24, %25 in 0 : vector<1x128xf32>, vector<136x128xf32>, vector<1x128xf32> -> vector<138x128xf32>
    %28 = vector.extract_strided_slice %27 {offsets = [0, 0], sizes = [136, 128], strides = [1, 1]} : vector<138x128xf32> to vector<136x128xf32>
    %29 = vector.extract_strided_slice %27 {offsets = [1, 0], sizes = [136, 128], strides = [1, 1]} : vector<138x128xf32> to vector<136x128xf32>
    %30 = vector.extract_strided_slice %27 {offsets = [2, 0], sizes = [136, 128], strides = [1, 1]} : vector<138x128xf32> to vector<136x128xf32>
    %31 = tpu.concatenate %28, %29, %30 in 1 : vector<136x128xf32>, vector<136x128xf32>, vector<136x128xf32> -> vector<136x384xf32>
    %32 = arith.truncf %31 : vector<136x384xf32> to vector<136x384xbf16>
    %c0_9 = arith.constant 0 : index
    %c0_10 = arith.constant 0 : index
    %c0_11 = arith.constant 0 : index
    %33 = vector.load %arg5[%c0_9, %c0_10, %c0_11] : memref<2x384x256xbf16, #tpu.memory_space<vmem>>, vector<1x384x256xbf16>
    %34 = vector.shape_cast %33 : vector<1x384x256xbf16> to vector<384x256xbf16>
    %cst_12 = arith.constant dense<0.000000e+00> : vector<136x256xf32>
    %35 = tpu.matmul %32, %34, %cst_12 {dimension_numbers = #tpu.dot_dimension_numbers<[1], [0], [0], [1], [0, 0, 1, 1], [], []>} : vector<136x384xbf16>, vector<384x256xbf16>, vector<136x256xf32> -> vector<136x256xf32>
    %c0_13 = arith.constant 0 : index
    %c0_14 = arith.constant 0 : index
    %c0_15 = arith.constant 0 : index
    %36 = vector.load %arg6[%c0_13, %c0_14, %c0_15] : memref<2x1x256xf32, #tpu.memory_space<vmem>>, vector<1x1x256xf32>
    %37 = vector.shape_cast %36 : vector<1x1x256xf32> to vector<1x256xf32>
    %38 = vector.broadcast %37 : vector<1x256xf32> to vector<136x256xf32>
    %39 = arith.addf %35, %38 : vector<136x256xf32>
    %40 = vector.extract_strided_slice %39 {offsets = [0, 0], sizes = [136, 128], strides = [1, 1]} : vector<136x256xf32> to vector<136x128xf32>
    %41 = math.tanh %40 : vector<136x128xf32>
    %42 = vector.extract_strided_slice %39 {offsets = [0, 128], sizes = [136, 128], strides = [1, 1]} : vector<136x256xf32> to vector<136x128xf32>
    %43 = arith.negf %42 : vector<136x128xf32>
    %44 = math.exp %43 : vector<136x128xf32>
    %cst_16 = arith.constant 1.000000e+00 : f32
    %45 = vector.broadcast %cst_16 : f32 to vector<136x128xf32>
    %46 = arith.addf %45, %44 : vector<136x128xf32>
    %47 = arith.divf %45, %46 : vector<136x128xf32>
    %48 = arith.mulf %41, %47 : vector<136x128xf32>
    %49 = arith.truncf %48 : vector<136x128xf32> to vector<136x128xbf16>
    %c0_17 = arith.constant 0 : index
    %c0_18 = arith.constant 0 : index
    %c0_19 = arith.constant 0 : index
    %50 = vector.load %arg7[%c0_17, %c0_18, %c0_19] : memref<2x128x256xbf16, #tpu.memory_space<vmem>>, vector<1x128x256xbf16>
    %51 = vector.shape_cast %50 : vector<1x128x256xbf16> to vector<128x256xbf16>
    %cst_20 = arith.constant dense<0.000000e+00> : vector<136x256xf32>
    %52 = tpu.matmul %49, %51, %cst_20 {dimension_numbers = #tpu.dot_dimension_numbers<[1], [0], [0], [1], [0, 0, 1, 1], [], []>} : vector<136x128xbf16>, vector<128x256xbf16>, vector<136x256xf32> -> vector<136x256xf32>
    %c0_21 = arith.constant 0 : index
    %c0_22 = arith.constant 0 : index
    %c0_23 = arith.constant 0 : index
    %53 = vector.load %arg8[%c0_21, %c0_22, %c0_23] : memref<2x1x256xf32, #tpu.memory_space<vmem>>, vector<1x1x256xf32>
    %54 = vector.shape_cast %53 : vector<1x1x256xf32> to vector<1x256xf32>
    %55 = vector.broadcast %54 : vector<1x256xf32> to vector<136x256xf32>
    %56 = arith.addf %52, %55 : vector<136x256xf32>
    %57 = vector.extract_strided_slice %56 {offsets = [0, 0], sizes = [136, 128], strides = [1, 1]} : vector<136x256xf32> to vector<136x128xf32>
    %58 = arith.addf %24, %57 : vector<136x128xf32>
    %cst_24 = arith.constant 0.000000e+00 : f32
    %59 = vector.shape_cast %20 : vector<136x1xi1> to vector<136x1xi1>
    %60 = vector.broadcast %59 : vector<136x1xi1> to vector<136x128xi1>
    %61 = vector.broadcast %cst_24 : f32 to vector<136x128xf32>
    %62 = arith.select %60, %58, %61 : vector<136x128xi1>, vector<136x128xf32>
    %63 = vector.extract_strided_slice %56 {offsets = [4, 128], sizes = [128, 128], strides = [1, 1]} : vector<136x256xf32> to vector<128x128xf32>
    %64 = arith.addf %26, %63 : vector<128x128xf32>
    %65 = tpu.concatenate %25, %62, %25 in 0 : vector<1x128xf32>, vector<136x128xf32>, vector<1x128xf32> -> vector<138x128xf32>
    %66 = vector.extract_strided_slice %65 {offsets = [0, 0], sizes = [136, 128], strides = [1, 1]} : vector<138x128xf32> to vector<136x128xf32>
    %67 = vector.extract_strided_slice %65 {offsets = [1, 0], sizes = [136, 128], strides = [1, 1]} : vector<138x128xf32> to vector<136x128xf32>
    %68 = vector.extract_strided_slice %65 {offsets = [2, 0], sizes = [136, 128], strides = [1, 1]} : vector<138x128xf32> to vector<136x128xf32>
    %69 = tpu.concatenate %66, %67, %68 in 1 : vector<136x128xf32>, vector<136x128xf32>, vector<136x128xf32> -> vector<136x384xf32>
    %70 = arith.truncf %69 : vector<136x384xf32> to vector<136x384xbf16>
    %c1 = arith.constant 1 : index
    %c0_25 = arith.constant 0 : index
    %c0_26 = arith.constant 0 : index
    %71 = vector.load %arg5[%c1, %c0_25, %c0_26] : memref<2x384x256xbf16, #tpu.memory_space<vmem>>, vector<1x384x256xbf16>
    %72 = vector.shape_cast %71 : vector<1x384x256xbf16> to vector<384x256xbf16>
    %cst_27 = arith.constant dense<0.000000e+00> : vector<136x256xf32>
    %73 = tpu.matmul %70, %72, %cst_27 {dimension_numbers = #tpu.dot_dimension_numbers<[1], [0], [0], [1], [0, 0, 1, 1], [], []>} : vector<136x384xbf16>, vector<384x256xbf16>, vector<136x256xf32> -> vector<136x256xf32>
    %c1_28 = arith.constant 1 : index
    %c0_29 = arith.constant 0 : index
    %c0_30 = arith.constant 0 : index
    %74 = vector.load %arg6[%c1_28, %c0_29, %c0_30] : memref<2x1x256xf32, #tpu.memory_space<vmem>>, vector<1x1x256xf32>
    %75 = vector.shape_cast %74 : vector<1x1x256xf32> to vector<1x256xf32>
    %76 = vector.broadcast %75 : vector<1x256xf32> to vector<136x256xf32>
    %77 = arith.addf %73, %76 : vector<136x256xf32>
    %78 = vector.extract_strided_slice %77 {offsets = [0, 0], sizes = [136, 128], strides = [1, 1]} : vector<136x256xf32> to vector<136x128xf32>
    %79 = math.tanh %78 : vector<136x128xf32>
    %80 = vector.extract_strided_slice %77 {offsets = [0, 128], sizes = [136, 128], strides = [1, 1]} : vector<136x256xf32> to vector<136x128xf32>
    %81 = arith.negf %80 : vector<136x128xf32>
    %82 = math.exp %81 : vector<136x128xf32>
    %cst_31 = arith.constant 1.000000e+00 : f32
    %83 = vector.broadcast %cst_31 : f32 to vector<136x128xf32>
    %84 = arith.addf %83, %82 : vector<136x128xf32>
    %85 = arith.divf %83, %84 : vector<136x128xf32>
    %86 = arith.mulf %79, %85 : vector<136x128xf32>
    %87 = arith.truncf %86 : vector<136x128xf32> to vector<136x128xbf16>
    %88 = vector.extract_strided_slice %87 {offsets = [4, 0], sizes = [128, 128], strides = [1, 1]} : vector<136x128xbf16> to vector<128x128xbf16>
    %c1_32 = arith.constant 1 : index
    %c0_33 = arith.constant 0 : index
    %c0_34 = arith.constant 0 : index
    %89 = vector.load %arg7[%c1_32, %c0_33, %c0_34] : memref<2x128x256xbf16, #tpu.memory_space<vmem>>, vector<1x128x256xbf16>
    %90 = vector.shape_cast %89 : vector<1x128x256xbf16> to vector<128x256xbf16>
    %91 = vector.extract_strided_slice %90 {offsets = [0, 0], sizes = [128, 128], strides = [1, 1]} : vector<128x256xbf16> to vector<128x128xbf16>
    %cst_35 = arith.constant dense<0.000000e+00> : vector<128x128xf32>
    %92 = tpu.matmul %88, %91, %cst_35 {dimension_numbers = #tpu.dot_dimension_numbers<[1], [0], [0], [1], [0, 0, 1, 1], [], []>} : vector<128x128xbf16>, vector<128x128xbf16>, vector<128x128xf32> -> vector<128x128xf32>
    %c1_36 = arith.constant 1 : index
    %c0_37 = arith.constant 0 : index
    %c0_38 = arith.constant 0 : index
    %93 = vector.load %arg8[%c1_36, %c0_37, %c0_38] : memref<2x1x256xf32, #tpu.memory_space<vmem>>, vector<1x1x256xf32>
    %94 = vector.shape_cast %93 : vector<1x1x256xf32> to vector<1x256xf32>
    %95 = vector.extract_strided_slice %94 {offsets = [0, 0], sizes = [1, 128], strides = [1, 1]} : vector<1x256xf32> to vector<1x128xf32>
    %96 = vector.broadcast %95 : vector<1x128xf32> to vector<128x128xf32>
    %97 = arith.addf %92, %96 : vector<128x128xf32>
    %98 = arith.addf %64, %97 : vector<128x128xf32>
    %c0_39 = arith.constant 0 : index
    %c0_40 = arith.constant 0 : index
    %99 = vector.load %arg9[%c0_39, %c0_40] : memref<4x128xbf16, #tpu.memory_space<vmem>>, vector<4x128xbf16>
    %100 = arith.truncf %98 : vector<128x128xf32> to vector<128x128xbf16>
    %cst_41 = arith.constant dense<0.000000e+00> : vector<4x128xf32>
    %101 = tpu.matmul %99, %100, %cst_41 {dimension_numbers = #tpu.dot_dimension_numbers<[1], [1], [0], [0], [0, 0, 1, 0], [], []>} : vector<4x128xbf16>, vector<128x128xbf16>, vector<4x128xf32> -> vector<4x128xf32>
    %c0_42 = arith.constant 0 : index
    %c0_43 = arith.constant 0 : index
    %102 = vector.load %arg10[%c0_42, %c0_43] : memref<4x1xf32, #tpu.memory_space<vmem>>, vector<4x1xf32>
    %103 = vector.broadcast %102 : vector<4x1xf32> to vector<4x128xf32>
    %104 = arith.addf %101, %103 : vector<4x128xf32>
    %c0_44 = arith.constant 0 : index
    %c0_45 = arith.constant 0 : index
    %c0_46 = arith.constant 0 : index
    %105 = vector.load %arg11[%c0_44, %c0_45, %c0_46] : memref<1x4x128xf32, #tpu.memory_space<vmem>>, vector<1x4x128xf32>
    %106 = vector.shape_cast %105 : vector<1x4x128xf32> to vector<4x128xf32>
    %107 = vector.shape_cast %104 : vector<4x128xf32> to vector<1x4x128xf32>
    tpu.vector_store %arg11[%c0_44, %c0_45, %c0_46], %107 {strides = array<i32>} : memref<1x4x128xf32, #tpu.memory_space<vmem>>, vector<1x4x128xf32>,
    return
  }
  func.func @transform_0(%arg0: i32, %arg1: i32) -> (i32, i32, i32) {
    %c0_i32 = arith.constant 0 : i32
    %c0_i32_0 = arith.constant 0 : i32
    %c0_i32_1 = arith.constant 0 : i32
    return %arg0, %c0_i32, %c0_i32_0 : i32, i32, i32
  }
  func.func @transform_1(%arg0: i32, %arg1: i32) -> (i32, i32) {
    %c0_i32 = arith.constant 0 : i32
    %c0_i32_0 = arith.constant 0 : i32
    %c0_i32_1 = arith.constant 0 : i32
    return %c0_i32, %c0_i32_0 : i32, i32
  }
  func.func @transform_2(%arg0: i32, %arg1: i32) -> (i32, i32) {
    %c0_i32 = arith.constant 0 : i32
    %c0_i32_0 = arith.constant 0 : i32
    %c0_i32_1 = arith.constant 0 : i32
    return %c0_i32, %c0_i32_0 : i32, i32
  }
  func.func @transform_3(%arg0: i32, %arg1: i32) -> (i32, i32, i32) {
    %c0_i32 = arith.constant 0 : i32
    %c0_i32_0 = arith.constant 0 : i32
    %c0_i32_1 = arith.constant 0 : i32
    %c0_i32_2 = arith.constant 0 : i32
    return %c0_i32, %c0_i32_0, %c0_i32_1 : i32, i32, i32
  }
  func.func @transform_4(%arg0: i32, %arg1: i32) -> (i32, i32, i32) {
    %c0_i32 = arith.constant 0 : i32
    %c0_i32_0 = arith.constant 0 : i32
    %c0_i32_1 = arith.constant 0 : i32
    %c0_i32_2 = arith.constant 0 : i32
    return %c0_i32, %c0_i32_0, %c0_i32_1 : i32, i32, i32
  }
  func.func @transform_5(%arg0: i32, %arg1: i32) -> (i32, i32, i32) {
    %c0_i32 = arith.constant 0 : i32
    %c0_i32_0 = arith.constant 0 : i32
    %c0_i32_1 = arith.constant 0 : i32
    %c0_i32_2 = arith.constant 0 : i32
    return %c0_i32, %c0_i32_0, %c0_i32_1 : i32, i32, i32
  }
  func.func @transform_6(%arg0: i32, %arg1: i32) -> (i32, i32, i32) {
    %c0_i32 = arith.constant 0 : i32
    %c0_i32_0 = arith.constant 0 : i32
    %c0_i32_1 = arith.constant 0 : i32
    %c0_i32_2 = arith.constant 0 : i32
    return %c0_i32, %c0_i32_0, %c0_i32_1 : i32, i32, i32
  }
  func.func @transform_7(%arg0: i32, %arg1: i32) -> (i32, i32) {
    %c0_i32 = arith.constant 0 : i32
    %c0_i32_0 = arith.constant 0 : i32
    %c0_i32_1 = arith.constant 0 : i32
    return %c0_i32, %c0_i32_0 : i32, i32
  }
  func.func @transform_8(%arg0: i32, %arg1: i32) -> (i32, i32) {
    %c0_i32 = arith.constant 0 : i32
    %c0_i32_0 = arith.constant 0 : i32
    %c0_i32_1 = arith.constant 0 : i32
    return %c0_i32, %c0_i32_0 : i32, i32
  }
  func.func @transform_9(%arg0: i32, %arg1: i32) -> (i32, i32, i32) {
    %c0_i32 = arith.constant 0 : i32
    %c0_i32_0 = arith.constant 0 : i32
    return %arg0, %c0_i32, %arg1 : i32, i32, i32
  }
}

</mosaic_0001>

<bundles_post_ra>
// kernel: tpu_custom_call.1
= control target key start
LH: loop header
LB: loop body
LE: loop exit
PB: predicated region body
PF: predicated region fallthrough
CT: control target
= control target key end

     0   :  { %14 = vsyncpa [#allocation3], 0  ;;  %s5169_s0 = inlined_call_operand.vmem [shape: f32[2,136,4], index: 0, kind: input, shape index: {}]   ;;  %s5170_s1 = inlined_call_operand.vmem [shape: bf16[4,128], index: 1, kind: input, shape index: {}]   ;;  %s5171_s2 = inlined_call_operand.vmem [shape: f32[1,128], index: 2, kind: input, shape index: {}]   ;;  %s5172_s3 = inlined_call_operand.hbm [shape: bf16[2,384,256], index: 3, kind: input, shape index: {}]   ;;  %s5173_s4 = inlined_call_operand.vmem [shape: f32[2,1,256], index: 4, kind: input, shape index: {}]   ;;  %s5174_s5 = inlined_call_operand.vmem [shape: bf16[2,128,256], index: 5, kind: input, shape index: {}]   ;;  %s5175_s6 = inlined_call_operand.vmem [shape: f32[2,1,256], index: 6, kind: input, shape index: {}]   ;;  %s5176_s7 = inlined_call_operand.vmem [shape: bf16[4,128], index: 7, kind: input, shape index: {}]   ;;  %s5177_s8 = inlined_call_operand.vmem [shape: f32[4,1], index: 8, kind: input, shape index: {}]   ;;  %s5178_s9 = inlined_call_operand.hbm [shape: f32[2,4,128], index: 9, kind: output, shape index: {}]  }
   0x1   :  { %15 = vsyncpa [#allocation4], 0 }
   0x2   :  { %17 = vsyncpa [#allocation4 + $0x1], 0  ;;  %s4306_s30 = smov 0   ;;  %s4308_s10 = smov 0  }
   0x3   :  { %s4310_s11 = smov 0   ;;  %s4312_s12 = smov 0  }
   0x4   :  { %s4314_s13 = smov 0   ;;  %s4316_s14 = smov 0  }
   0x5 LB: > { %s3212_s15 = sadd.s32 4294967295, %s4246_s14   ;;  %s3213_s16 = sadd.s32 4294967294, %s4246_s14   ;;  %s4246_s14 = sphi %s4316_s14, %s23_s14   ;;  %s4242_s13 = sphi %s4314_s13, %s5201_s13   ;;  %s4238_s12 = sphi %s4312_s12, %s5200_s12   ;;  %s4234_s11 = sphi %s4310_s11, %s5199_s11   ;;  %s4230_s10 = sphi %s4308_s10, %s5198_s10   ;;  %s4226_s30 = sphi %s4306_s30, %s5197_s30  }
   0x6   : > { %s35_s17 = sadd.s32 1, %s4242_s13  ;;  %s238_s18 = sadd.s32 1, %s4234_s11 }
   0x7   : > { %p37_p0 = scmp.ge.s32.totalorder %s35_s17, 2  ;;  %p248_p1 = scmp.ne.s32.totalorder %s4234_s11, %s4230_s10 }
   0x8   : > { %p249_p2 = scmp.eq.s32.totalorder %s3212_s15, 1  ;;  %p254_p3 = scmp.ne.s32.totalorder %s4230_s10, %s4226_s30 }
   0x9   : > { %s5203_s17 = smov (%p37_p0, %s35_s17), 0  ;;  %p255_p5 = scmp.eq.s32.totalorder %s3213_s16, 1 }
   0xa   : > { %5184 = sst [smem:[#allocation8_spill]] %s5203_s17  ;;  %p4346_p4 = por %p249_p2, %p248_p1 }
   0xb   : > { %s233_s20 = ssub.s32 %s4242_s13, %s5203_s17  ;;  %p3214_p6 = scmp.ge.s32.totalorder %s4246_s14, 1 }
   0xc   : > { %s5185_s19 = scalar_select %p4346_p4, 1, 0 }
   0xd   : > { %p236_p7 = scmp.eq.s32.totalorder %s233_s20, 0  ;;  %p4353_p8 = por %p255_p5, %p254_p3 }
   0xe   : > { %p262_p9 = scmp.lt.s32.totalorder %s4246_s14, 3  ;;  %p4365_p11 = scmp.eq.s32.totalorder %s3212_s15, 0 }
   0xf   : > { %s5186_s21 = scalar_select %p4353_p8, 1, 0 }
  0x10   : > { %s4359_s22 = scalar_select %p236_p7, %s4234_s11, %s238_s18  }
  0x11   : > { %p4361_p10 = pnand %p3214_p6, %p262_p9  ;;  %s4248_s25 = smov [#allocation2]  }
  0x12   : > { %s5188_s24 = scalar_select %p4365_p11, 1, 0 }
  0x13   : > { %s5187_s23 = scalar_select %p4361_p10, 1, 0 }
  0x14   : > { %p3689_p12 = pneg %p4361_p10  ;;  %s280_s26 = sshll.u32 %s4248_s25, 4  ;;  %s281_s26 = int_to_ptr.vmem [resolvable:$true] %s280_s26 }
  0x15   : > { %s4136_s16 = scalar_lea.hbm %s5172_s3, 12288 }
  0x16   : > { %p4373_p13 = pnand %p4365_p11, %p3689_p12  ;;  %p4137_p0 = scmp.ne.s32.totalorder %s5172_s3, %s4136_s16 }
  0x17   : > { %p4143_p5 = scmp.lt.u32.totalorder %s4136_s16, %s5172_s3 }
  0x18   : > { %p4138_p1 = pneg %p4373_p13 }
  0x1a   : > { %p4139_p2 = pnand %p4138_p1, %p4137_p0 }
  0x1c   : > { %p4140_p3 = pneg %p4139_p2 }
  0x1e   : > { %p4145_p6 = pnand %p4143_p5, %p4140_p3 }
  0x20   : > { %4148 = shalt.err (!%p4145_p6)
}
  0x21   : > { %s4149_s17 = scalar_lea.vmem %s281_s26, 12288  ;;  %p4157_p8 = scmp.lt.s32.totalorder %s281_s26, %s281_s26 }
  0x22   : > { %p4150_p7 = scmp.ne.s32.totalorder %s281_s26, %s4149_s17  ;;  %p4158_p4 = scmp.lt.s32.totalorder %s4149_s17, %s4149_s17 }
  0x24   : > { %p4152_p9 = pnand %p4150_p7, %p4138_p1  ;;  %p4159_p11 = por %p4158_p4, %p4157_p8 }
  0x26   : > { %p4153_p12 = pneg %p4152_p9 }
  0x28   : > { %p4160_p10 = pnand %p4159_p11, %p4153_p12 }
  0x2a   : > { %4163 = shalt.err (!%p4160_p10)
}
  0x2b   : > { %s4249_s28 = smov 128   ;;  %s4250_s29 = smov 8  }
  0x2c   : > { %3692 = dma.hbm_to_vmem [thread:$0]  (!%p4373_p13), %s5172_s3, 12288, %s281_s26, [#allocation3], %s4249_s28, %s4249_s28, %s4250_s29  }
  0x2d   : > { %p5190_p0 = scmp.ne.s32.totalorder %s5187_s23, 0 }
  0x2e   : > { %p5191_p2 = scmp.ne.s32.totalorder (!%p5190_p0), %s5188_s24, 0 }
  0x2f   : > { %319 = sbr.rel (%p5190_p0) target bundleno = 1714 (0x6b2), region = 56 }
  0x36   : > { %4217 = dma.done.wait (%p5191_p2), [#allocation3], 12288  }
  0x37   : > { %4219 = vsyncadd (%p5191_p2), [#allocation3], 4294955008  ;;  %p355_p4 = scmp.lt.s32.totalorder %s4238_s12, 1  ;;  %v4251_v0 = vmov 0.0   ;;  %vm4252_vm0 = vmmov 0   ;;  %vm425_vm1 = vcmask 1041408   ;;  %v533_v63 = vlaneseq }
  0x38   : > { %3450 = vmatprep.subr.bf16.mxu0 %v4251_v0  ;;  %3452 = vmatprep.mubr.msk.bf16.mxu0 %vm4252_vm0, %v4251_v0  ;;  %v389_v1 = vld [vmem:[%s5170_s1] sm:$0x3]  ;;  %vm397_vm2 = vcmask 31744   ;;  %v3758_v11 = vld [vmem:[#allocation2 + $0x4] ss:$8 sps:$4 sm:$0xff]   ;;  %v4253_v62 = vmov 0  }
  0x39   : > { %s356_s17 = scalar_select %p355_p4, %s4238_s12, 1  ;;  %3540 = vmatprep.subr.bf16.mxu1 %v4251_v0  ;;  %3468 = vmatprep.mubr.msk.bf16.mxu1 %vm4252_vm0, %v4251_v0  ;;  %v427_v4 = vsel %vm425_vm1, %v389_v1, 0  ;;  %v3756_v10 = vld [vmem:[#allocation2] ss:$8 sps:$4 sm:$0xff]   ;;  %v3761_v13 = vld [vmem:[#allocation2 + $0x14] ss:$8 sps:$4 sm:$0xff]  }
  0x3a   : > { %3451 = vmatpush3.bf16.msra.mxu0 %v427_v4  ;;  %3541 = vmatpush3.bf16.msra.mxu1 %v427_v4  ;;  %v3759_v14 = vld [vmem:[#allocation2 + $0x10] ss:$8 sps:$4 sm:$0xff]   ;;  %v3764_v16 = vld [vmem:[#allocation2 + $0x24] ss:$8 sps:$4 sm:$0xff]   ;;  %v3762_v18 = vld [vmem:[#allocation2 + $0x20] ss:$8 sps:$4 sm:$0xff]  }
  0x3b   : > { %s3682_s23 = smul.u32 136, %s356_s17  ;;  %1178 = vmatprep.subr.bf16.mxu1 %v3758_v11  ;;  %v3767_v19 = vld [vmem:[#allocation2 + $0x34] ss:$8 sps:$4 sm:$0xff]   ;;  %v3765_v24 = vld [vmem:[#allocation2 + $0x30] ss:$8 sps:$4 sm:$0xff]   ;;  %3755 = vset.pattern.permute.xlu0 %v4253_v62  ;;  %v4457_v1 = vshrl.u32 %v533_v63, 7 }
  0x3c   : > { %v3770_v26 = vld [vmem:[#allocation2 + $0x44] ss:$8 sps:$4 sm:$0xff]   ;;  %v3768_v29 = vld [vmem:[#allocation2 + $0x40] ss:$8 sps:$4 sm:$0xff]   ;;  %v3773_v30 = vld [vmem:[#allocation2 + $0x54] ss:$8 sps:$4 sm:$0xff]  }
  0x3d   : > { %s4410_s27 = scalar_lea.vmem %s5169_s0, %s3682_s23  ;;  %v3771_v34 = vld [vmem:[#allocation2 + $0x50] ss:$8 sps:$4 sm:$0xff]   ;;  %v3776_v35 = vld [vmem:[#allocation2 + $0x64] ss:$8 sps:$4 sm:$0xff]   ;;  %v3774_v37 = vld [vmem:[#allocation2 + $0x60] ss:$8 sps:$4 sm:$0xff]  }
  0x3e   : > { %v363_v2 = vld [vmem:[%s4410_s27] sm:$0xff]  ;;  %v364_v3 = vld [vmem:[%s4410_s27 + $0x8] sm:$0xff]  ;;  %v365_v8 = vld [vmem:[%s4410_s27 + $0x10] sm:$0xff]  ;;  %vm689_vm4 = vcmask 1040384   ;;  %vm798_vm5 = vcmask 1045504   ;;  %vm745_vm6 = vcmask 1046528  }
  0x3f   : > { %v380_v5 = vpack.c.bf16 %v364_v3, %v363_v2  ;;  %v371_v6 = vld [vmem:[%s4410_s27 + $0x40] sm:$0xff]  ;;  %v372_v7 = vld [vmem:[%s4410_s27 + $0x48] sm:$0xff]  ;;  %v366_v12 = vld [vmem:[%s4410_s27 + $0x18] sm:$0xff]  ;;  %v4460_v2 = vadd.s32 4294967292, %v4457_v1  ;;  %vm4254_vm8 = vmmov 1   ;;  %vm2958_vm11 = vcmask 1043456  }
  0x40   : > { %v384_v9 = vpack.c.bf16 %v372_v7, %v371_v6  ;;  %v381_v15 = vpack.c.bf16 %v366_v12, %v365_v8  ;;  %v367_v17 = vld [vmem:[%s4410_s27 + $0x20] sm:$0xff]  ;;  %v368_v20 = vld [vmem:[%s4410_s27 + $0x28] sm:$0xff]  ;;  %v373_v21 = vld [vmem:[%s4410_s27 + $0x50] sm:$0xff]  ;;  %s352_s29 = sand.u32 1, %s4230_s10   ;;  %s3412_s18 = sshll.u32 %s4238_s12, 6 }
  0x41   : > { %3453 = vmatmul.mubr.msk.bf16.vlgmr.msra.gmra.mrb[0].mxu0 %vm397_vm2, %v380_v5  ;;  %v374_v22 = vld [vmem:[%s4410_s27 + $0x58] sm:$0xff]  ;;  %v382_v25 = vpack.c.bf16 %v368_v20, %v367_v17  ;;  %v375_v27 = vld [vmem:[%s4410_s27 + $0x60] sm:$0xff]  ;;  %v376_v28 = vld [vmem:[%s4410_s27 + $0x68] sm:$0xff]  ;;  %vm570_vm3 = vcmp.ge.s32.totalorder %v4460_v2, 0  ;;  %s3219_s15 = sshll.u32 %s352_s29, 2  ;;  %s3116_s16 = scalar_lea.sflag [#allocation4], %s352_s29 }
  0x42   : > { %3456 = vmatprep.mubr.msk.bf16.mxu0 %vm4252_vm0, %v4251_v0  ;;  %3469 = vmatmul.mubr.msk.bf16.vlgmr.msra.gmra.mrb[0].mxu1 %vm397_vm2, %v384_v9  ;;  %v385_v23 = vpack.c.bf16 %v374_v22, %v373_v21  ;;  %v369_v31 = vld [vmem:[%s4410_s27 + $0x30] sm:$0xff]  ;;  %v370_v32 = vld [vmem:[%s4410_s27 + $0x38] sm:$0xff]  ;;  %v386_v33 = vpack.c.bf16 %v376_v28, %v375_v27  ;;  %v3782_v40 = vld [vmem:[#allocation2 + $0x84] ss:$8 sps:$4 sm:$0xff]   ;;  %s354_s17 = scalar_lea.vmem [#allocation5], %s3219_s15  ;;  %p5194_p10 = scmp.ne.s32.totalorder %s5185_s19, 0 }
  0x43   : > { %3472 = vmatprep.mubr.msk.bf16.mxu1 %vm4252_vm0, %v4251_v0  ;;  %1179 = vmatpush1.bf16.msra.mxu1 %v3756_v10  ;;  %v383_v36 = vpack.c.bf16 %v370_v32, %v369_v31  ;;  %v3779_v38 = vld [vmem:[#allocation2 + $0x74] ss:$8 sps:$4 sm:$0xff]   ;;  %v3777_v39 = vld [vmem:[#allocation2 + $0x70] ss:$8 sps:$4 sm:$0xff]   ;;  %v3780_v41 = vld [vmem:[#allocation2 + $0x80] ss:$8 sps:$4 sm:$0xff]  }
  0x44   : > { %1180 = vmatprep.subr.bf16.mxu1 %v3761_v13  ;;  %v3785_v42 = vld [vmem:[#allocation2 + $0x94] ss:$8 sps:$4 sm:$0xff]   ;;  %v3783_v43 = vld [vmem:[#allocation2 + $0x90] ss:$8 sps:$4 sm:$0xff]   ;;  %v3788_v44 = vld [vmem:[#allocation2 + $0xa4] ss:$8 sps:$4 sm:$0xff]  }
  0x45   : > { %v3786_v45 = vld [vmem:[#allocation2 + $0xa0] ss:$8 sps:$4 sm:$0xff]   ;;  %v3791_v46 = vld [vmem:[#allocation2 + $0xb4] ss:$8 sps:$4 sm:$0xff]   ;;  %v3789_v49 = vld [vmem:[#allocation2 + $0xb0] ss:$8 sps:$4 sm:$0xff]  }
  0x46   : > { %v377_v47 = vld [vmem:[%s4410_s27 + $0x70] sm:$0xff]  ;;  %v378_v48 = vld [vmem:[%s4410_s27 + $0x78] sm:$0xff]  ;;  %v3794_v51 = vld [vmem:[#allocation2 + $0xc4] ss:$8 sps:$4 sm:$0xff]   ;;  %s3130_s23 = sshll.u32 %s354_s17, 4  ;;  %s4255_s20 = smov [#allocation5]   ;;  %s5124_s23 = int_to_ptr.vmem [resolvable:$true] %s3130_s23 }
  0x47   : > { %1181 = vmatpush1.bf16.msra.mxu1 %v3759_v14  ;;  %v387_v50 = vpack.c.bf16 %v378_v48, %v377_v47  ;;  %v3792_v52 = vld [vmem:[#allocation2 + $0xc0] ss:$8 sps:$4 sm:$0xff]   ;;  %v3797_v53 = vld [vmem:[#allocation2 + $0xd4] ss:$8 sps:$4 sm:$0xff]   ;;  %v3795_v56 = vld [vmem:[#allocation2 + $0xd0] ss:$8 sps:$4 sm:$0xff]  }
  0x48   : > { %1182 = vmatprep.subr.bf16.mxu1 %v3764_v16  ;;  %v379_v54 = vld [vmem:[%s4410_s27 + $0x80] sm:$0xff]  ;;  %v3803_v59 = vld [vmem:[#allocation2 + $0xf4] ss:$8 sps:$4 sm:$0xff]   ;;  %v3801_v60 = vld [vmem:[#allocation2 + $0xf0] ss:$8 sps:$4 sm:$0xff]   ;;  %s5122_s27 = scalar_lea.hbm %s5178_s9, %s3412_s18  ;;  %s4164_s12 = scalar_lea.vmem %s5124_s23, 64 }
  0x49   : > { %3457 = vmatmul.mubr.msk.bf16.gmra.mrb[4].mxu0 %vm397_vm2, %v381_v15  ;;  %v388_v55 = vpack.c.bf16 %v379_v54, %v379_v54  ;;  %v3800_v57 = vld [vmem:[#allocation2 + $0xe4] ss:$8 sps:$4 sm:$0xff]   ;;  %v3798_v58 = vld [vmem:[#allocation2 + $0xe0] ss:$8 sps:$4 sm:$0xff]   ;;  %vm3279_vm7 = vmneg %vm689_vm4  ;;  %p4165_p8 = scmp.ne.s32.totalorder %s5124_s23, %s4164_s12  ;;  %s4168_s25 = sshll.u32 %s4255_s20, 4  ;;  %s4169_s25 = int_to_ptr.vmem [resolvable:$false] %s4168_s25 }
  0x4a   : > { %3460 = vmatprep.mubr.msk.bf16.mxu0 %vm4252_vm0, %v4251_v0  ;;  %3473 = vmatmul.mubr.msk.bf16.gmra.mrb[4].mxu1 %vm397_vm2, %v385_v23  ;;  %v3806_v61 = vld [vmem:[#allocation2 + $0x104] ss:$8 sps:$4 sm:$0xff]   ;;  %v4465_v3 = vld [vmem:[%s5171_s2] ss:$0 sm:$0xff]  ;;  %vm4510_vm9 = vmpackc.low %vm4254_vm8, %vm3279_vm7  ;;  %s4170_s28 = scalar_lea.vmem %s4169_s25, 128  ;;  %p4171_p1 = scmp.lt.s32.totalorder %s5124_s23, %s4169_s25 }
  0x4b   : > { %1183 = vmatpush1.bf16.msra.mxu1 %v3762_v18  ;;  %3476 = vmatprep.mubr.msk.bf16.mxu1 %vm4252_vm0, %v4251_v0  ;;  %p4166_p11 = pnand %p4165_p8, %p5194_p10  ;;  %p4172_p3 = scmp.lt.s32.totalorder %s4170_s28, %s4164_s12 }
  0x4c   : > { %1184 = vmatprep.subr.bf16.mxu1 %v3767_v19 }
  0x4d   : > { %p4167_p13 = pneg %p4166_p11  ;;  %p4173_p5 = por %p4172_p3, %p4171_p1 }
  0x4f   : > { %1185 = vmatpush1.bf16.msra.mxu1 %v3765_v24  ;;  %v542_v24 = vadd.s32 64, %v4457_v1  ;;  %p4174_p6 = pnand %p4173_p5, %p4167_p13 }
  0x50   : > { %1186 = vmatprep.subr.bf16.mxu1 %v3770_v26 }
  0x51   : > { %3461 = vmatmul.mubr.msk.bf16.gmra.mrb[8].mxu0 %vm397_vm2, %v382_v25 }
  0x52   : > { %3464 = vmatprep.mubr.msk.bf16.mxu0 %vm4252_vm0, %v4251_v0  ;;  %3477 = vmatmul.mubr.msk.bf16.gmra.mrb[8].mxu1 %vm397_vm2, %v386_v33 }
  0x53   : > { %1187 = vmatpush1.bf16.msra.mxu1 %v3768_v29  ;;  %3480 = vmatprep.mubr.msk.bf16.mxu1 %vm4252_vm0, %v4251_v0 }
  0x54   : > { %1188 = vmatprep.subr.bf16.mxu1 %v3773_v30 }
  0x57   : > { %1189 = vmatpush1.bf16.msra.mxu1 %v3771_v34 }
  0x58   : > { %1190 = vmatprep.subr.bf16.mxu1 %v3776_v35  ;;  %v4495_v35 = vadd.s32 4294967292, %v542_v24 }
  0x59   : > { %3465 = vmatmul.mubr.msk.bf16.gmra.mrb[12].mxu0 %vm397_vm2, %v383_v36 }
  0x5a   : > { %3481 = vmatmul.mubr.msk.bf16.gmra.mrb[12].mxu1 %vm397_vm2, %v387_v50  ;;  %1705 = vmatprep.mubr.bf16.mxu0 %v4253_v62  ;;  %vm595_vm10 = vcmp.lt.s32.totalorder %v4495_v35, 64 }
  0x5b   : > { %1191 = vmatpush1.bf16.msra.mxu1 %v3774_v37  ;;  %3484 = vmatprep.mubr.msk.bf16.mxu1 %vm4252_vm0, %v4251_v0 }
  0x5c   : > { %1192 = vmatprep.subr.bf16.mxu1 %v3779_v38 }
  0x5f   : > { %1193 = vmatpush1.bf16.msra.mxu1 %v3777_v39 }
  0x60   : > { %1194 = vmatprep.subr.bf16.mxu1 %v3782_v40 }
  0x62   : > { %3485 = vmatmul.mubr.msk.bf16.gmra.mrb[16].mxu1 %vm397_vm2, %v388_v55  ;;  %v3809_v55 = vld [vmem:[#allocation2 + $0x114] ss:$8 sps:$4 sm:$0xff]  }
  0x63   : > { %1195 = vmatpush1.bf16.msra.mxu1 %v3780_v41 }
  0x64   : > { %1196 = vmatprep.subr.bf16.mxu1 %v3785_v42 }
  0x67   : > { %1197 = vmatpush1.bf16.msra.mxu1 %v3783_v43 }
  0x68   : > { %1198 = vmatprep.subr.bf16.mxu1 %v3788_v44 }
  0x6b   : > { %1199 = vmatpush1.bf16.msra.mxu1 %v3786_v45 }
  0x6c   : > { %1200 = vmatprep.subr.bf16.mxu1 %v3791_v46 }
  0x6f   : > { %1201 = vmatpush1.bf16.msra.mxu1 %v3789_v49 }
  0x70   : > { %1202 = vmatprep.subr.bf16.mxu1 %v3794_v51  ;;  %v3804_v51 = vld [vmem:[#allocation2 + $0x100] ss:$8 sps:$4 sm:$0xff]  }
  0x73   : > { %1203 = vmatpush1.bf16.msra.mxu1 %v3792_v52 }
  0x74   : > { %1204 = vmatprep.subr.bf16.mxu1 %v3797_v53 }
  0x77   : > { %1205 = vmatpush1.bf16.msra.mxu1 %v3795_v56 }
  0x78   : > { %1206 = vmatprep.subr.bf16.mxu1 %v3800_v57 }
  0x7b   : > { %1207 = vmatpush1.bf16.msra.mxu1 %v3798_v58 }
  0x7c   : > { %1208 = vmatprep.subr.bf16.mxu1 %v3803_v59 }
  0x7f   : > { %1209 = vmatpush1.bf16.msra.mxu1 %v3801_v60 }
  0x80   : > { %1299 = vmatprep.subr.bf16.mxu1 %v3806_v61 }
 0x114   : > { %v463_v4 = vpop.f32.mrb[0].mxu0 }
 0x115   : > { %v464_v5 = vadd.f32 %v4465_v3, %v463_v4  ;;  %v3454_v6 = vpop.f32.mrb[1].mxu0  ;;  %v495_v7 = vpop.f32.mrb[0].mxu1 }
 0x116   : > { %v466_v8 = vpop.f32.mrb[2].mxu0  ;;  %v3470_v9 = vpop.f32.mrb[1].mxu1  ;;  %v496_v46 = vadd.f32 %v4465_v3, %v495_v7  ;;  %v3807_v7 = vld [vmem:[#allocation2 + $0x110] ss:$8 sps:$4 sm:$0xff]  }
 0x117   : > { %v4471_v10 = vsel %vm570_vm3, %v464_v5, 0.0  ;;  %v4474_v11 = vadd.f32 %v4465_v3, %v466_v8  ;;  %v3455_v12 = vpop.f32.mrb[3].mxu0  ;;  %v498_v13 = vpop.f32.mrb[2].mxu1 }
 0x118   : > { %v690_v14 = vrot.slane %v4471_v10, 7  ;;  %v3471_v15 = vpop.f32.mrb[3].mxu1  ;;  %v4532_v63 = vsel %vm595_vm10, %v496_v46, 0.0  ;;  %v3812_v13 = vld [vmem:[#allocation2 + $0x124] ss:$8 sps:$4 sm:$0xff]  }
 0x119   : > { %v691_v16 = vrot.slane %v4474_v11, 7 }
 0x11a   : > { %v741_v17 = vsel %vm689_vm4, 0.0, %v690_v14 }
 0x11b   : > { %v799_v18 = vrot.slane %v741_v17, 2  ;;  %v692_v19 = vsel %vm689_vm4, %v690_v14, %v691_v16  ;;  %v746_v30 = vrot.slane %v741_v17, 1  ;;  %v4543_v17 = vrot.slane %v4251_v0, 7 }
 0x11c   : > { %v800_v20 = vrot.slane %v692_v19, 2  ;;  %v471_v21 = vpop.f32.mrb[4].mxu0  ;;  %v747_v31 = vrot.slane %v692_v19, 1  ;;  %v3281_v53 = vpack.c.bf16 %v692_v19, %v690_v14 }
 0x11d   : > { %v4481_v22 = vadd.f32 %v4465_v3, %v471_v21  ;;  %v3458_v23 = vpop.f32.mrb[5].mxu0  ;;  %v503_v32 = vpop.f32.mrb[4].mxu1 }
 0x11e   : > { %v474_v25 = vpop.f32.mrb[6].mxu0  ;;  %v4485_v26 = vsel %vm798_vm5, %v799_v18, %v800_v20  ;;  %v3474_v36 = vpop.f32.mrb[5].mxu1  ;;  %v748_v44 = vsel %vm745_vm6, %v746_v30, %v747_v31 }
 0x11f   : > { %v693_v27 = vrot.slane %v4481_v22, 7  ;;  %v4489_v28 = vadd.f32 %v4465_v3, %v474_v25  ;;  %v3459_v29 = vpop.f32.mrb[7].mxu0  ;;  %v506_v39 = vpop.f32.mrb[6].mxu1 }
 0x120   : > { %v3475_v41 = vpop.f32.mrb[7].mxu1  ;;  %v3810_v29 = vld [vmem:[#allocation2 + $0x120] ss:$8 sps:$4 sm:$0xff]  }
 0x121   : > { %v4492_v33 = vsel %vm689_vm4, %v691_v16, %v693_v27  ;;  %v695_v34 = vrot.slane %v4489_v28, 7  ;;  %v705_v16 = vrot.slane %v4532_v63, 7 }
 0x122   : > { %v749_v37 = vrot.slane %v4492_v33, 1  ;;  %v802_v38 = vrot.slane %v4492_v33, 2 }
 0x123   : > { %v4501_v40 = vsel %vm689_vm4, %v693_v27, %v695_v34  ;;  %v4563_v39 = vsel %vm689_vm4, %v705_v16, %v4543_v17 }
 0x124   : > { %v804_v42 = vrot.slane %v4501_v40, 2  ;;  %v479_v43 = vpop.f32.mrb[8].mxu0  ;;  %v750_v45 = vsel %vm745_vm6, %v747_v31, %v749_v37  ;;  %v4516_v52 = vsel %vm798_vm5, %v800_v20, %v802_v38  ;;  %v751_v61 = vrot.slane %v4501_v40, 1 }
 0x125   : > { %v4508_v47 = vadd.f32 %v4465_v3, %v479_v43  ;;  %v3462_v48 = vpop.f32.mrb[9].mxu0  ;;  %v852_v49 = vpack.c.bf16 %v750_v45, %v748_v44  ;;  %v853_v56 = vpack.c.bf16 %v4516_v52, %v4485_v26  ;;  %v511_v4 = vpop.f32.mrb[8].mxu1  ;;  %v854_v32 = vpack.c.bf16 %v4501_v40, %v4492_v33  ;;  %v3813_v44 = vld [vmem:[#allocation2 + $0x130] ss:$8 sps:$4 sm:$0xff]  }
 0x126   : > { %v482_v54 = vpop.f32.mrb[10].mxu0  ;;  %v4521_v57 = vsel %vm798_vm5, %v802_v38, %v804_v42  ;;  %v3478_v8 = vpop.f32.mrb[9].mxu1  ;;  %v752_v21 = vsel %vm745_vm6, %v749_v37, %v751_v61  ;;  %v3818_v48 = vld [vmem:[#allocation2 + $0x144] ss:$8 sps:$4 sm:$0xff]  }
 0x127   : > { %v697_v58 = vrot.slane %v4508_v47, 7  ;;  %v4525_v59 = vadd.f32 %v4465_v3, %v482_v54  ;;  %v3463_v60 = vpop.f32.mrb[11].mxu0  ;;  %1210 = vmatprep.mubr.bf16.mxu1 %v852_v49  ;;  %v514_v14 = vpop.f32.mrb[10].mxu1  ;;  %v816_v49 = vrot.slane %v4563_v39, 2 }
 0x128   : > { %3282 = vmatmul.mubr.msk.bf16.vlgmr.msra.gmra.mrb[20].mxu1 %vm4510_vm9, %v3281_v53  ;;  %v3479_v18 = vpop.f32.mrb[11].mxu1 }
 0x129   : > { %v4535_v5 = vsel %vm689_vm4, %v695_v34, %v697_v58  ;;  %v699_v6 = vrot.slane %v4525_v59, 7  ;;  %1300 = vmatpush1.bf16.msra.mxu1 %v3804_v51  ;;  %v3815_v34 = vld [vmem:[#allocation2 + $0x134] ss:$8 sps:$4 sm:$0xff]   ;;  %v4572_v51 = vrot.slane %v4543_v17, 2 }
 0x12a   : > { %v753_v9 = vrot.slane %v4535_v5, 1  ;;  %v806_v12 = vrot.slane %v4535_v5, 2  ;;  %1301 = vmatprep.subr.bf16.mxu1 %v3809_v55  ;;  %v3821_v18 = vld [vmem:[#allocation2 + $0x154] ss:$8 sps:$4 sm:$0xff]  }
 0x12b   : > { %v700_v15 = vsel %vm689_vm4, %v697_v58, %v699_v6  ;;  %v4585_v14 = vsel %vm798_vm5, %v816_v49, %v4572_v51  ;;  %v4638_v26 = vpack.c.bf16 %v4572_v51, %v4572_v51 }
 0x12c   : > { %v808_v19 = vrot.slane %v700_v15, 2  ;;  %v487_v20 = vpop.f32.mrb[12].mxu0  ;;  %v754_v23 = vsel %vm745_vm6, %v751_v61, %v753_v9  ;;  %v4551_v30 = vsel %vm798_vm5, %v804_v42, %v806_v12  ;;  %v755_v33 = vrot.slane %v700_v15, 1 }
 0x12d   : > { %v4548_v24 = vadd.f32 %v4465_v3, %v487_v20  ;;  %v3466_v25 = vpop.f32.mrb[13].mxu0  ;;  %v855_v27 = vpack.c.bf16 %v754_v23, %v752_v21  ;;  %1302 = vmatpush1.bf16.msra.mxu1 %v3807_v7  ;;  %v856_v36 = vpack.c.bf16 %v4551_v30, %v4521_v57  ;;  %v3830_v30 = vld [vmem:[%s5174_s5 + $0x4] ss:$8 sps:$4 sm:$0xff]  }
 0x12e   : > { %v490_v31 = vpop.f32.mrb[14].mxu0  ;;  %1303 = vmatprep.subr.bf16.mxu1 %v3812_v13  ;;  %v4558_v37 = vsel %vm798_vm5, %v806_v12, %v808_v19  ;;  %v756_v61 = vsel %vm745_vm6, %v753_v9, %v755_v33  ;;  %v3816_v13 = vld [vmem:[#allocation2 + $0x140] ss:$8 sps:$4 sm:$0xff]   ;;  %v763_v25 = vrot.slane %v4563_v39, 1  ;;  %1673 = vmatprep.subr.bf16.mxu0 %v3830_v30 }
 0x12f   : > { %v701_v38 = vrot.slane %v4548_v24, 7  ;;  %v4566_v41 = vadd.f32 %v4465_v3, %v490_v31  ;;  %v3467_v42 = vpop.f32.mrb[15].mxu0  ;;  %1220 = vmatprep.mubr.bf16.mxu1 %v855_v27  ;;  %v4595_v27 = vrot.slane %v4543_v17, 1  ;;  %v3824_v31 = vld [vmem:[#allocation2 + $0x164] ss:$8 sps:$4 sm:$0xff]  }
 0x130   : > { %1221 = vmatmul.mubr.bf16.gmra.mrb[24].mxu1 %v854_v32  ;;  %v3827_v42 = vld [vmem:[#allocation2 + $0x174] ss:$8 sps:$4 sm:$0xff]  }
 0x131   : > { %v702_v40 = vsel %vm689_vm4, %v699_v6, %v701_v38  ;;  %v703_v43 = vrot.slane %v4566_v41, 7  ;;  %1304 = vmatpush1.bf16.msra.mxu1 %v3810_v29 }
 0x132   : > { %v757_v45 = vrot.slane %v702_v40, 1  ;;  %v810_v46 = vrot.slane %v702_v40, 2  ;;  %1305 = vmatprep.subr.bf16.mxu1 %v3815_v34  ;;  %v766_v34 = vsel %vm745_vm6, %v763_v25, %v4595_v27 }
 0x133   : > { %v704_v3 = vsel %vm689_vm4, %v701_v38, %v703_v43  ;;  %v706_v53 = vsel %vm689_vm4, %v703_v43, %v705_v16  ;;  %v857_v16 = vpack.c.bf16 %v700_v15, %v4535_v5  ;;  %v3819_v15 = vld [vmem:[#allocation2 + $0x150] ss:$8 sps:$4 sm:$0xff]  }
 0x134   : > { %v759_v54 = vrot.slane %v704_v3, 1  ;;  %v761_v55 = vrot.slane %v706_v53, 1  ;;  %v812_v58 = vrot.slane %v704_v3, 2  ;;  %v814_v60 = vrot.slane %v706_v53, 2  ;;  %v3825_v43 = vld [vmem:[#allocation2 + $0x170] ss:$8 sps:$4 sm:$0xff]  }
 0x135   : > { %v758_v4 = vsel %vm745_vm6, %v755_v33, %v757_v45  ;;  %1306 = vmatpush1.bf16.msra.mxu1 %v3813_v44  ;;  %v4579_v6 = vsel %vm798_vm5, %v808_v19, %v810_v46  ;;  %v860_v38 = vpack.c.bf16 %v704_v3, %v702_v40  ;;  %v4603_v44 = vpack.c.bf16 %v4595_v27, %v4595_v27  ;;  %v519_v3 = vpop.f32.mrb[12].mxu1 }
 0x136   : > { %v858_v7 = vpack.c.bf16 %v758_v4, %v756_v61  ;;  %v760_v8 = vsel %vm745_vm6, %v757_v45, %v759_v54  ;;  %v762_v12 = vsel %vm745_vm6, %v759_v54, %v761_v55  ;;  %1307 = vmatprep.subr.bf16.mxu1 %v3818_v48  ;;  %v859_v20 = vpack.c.bf16 %v4579_v6, %v4558_v37  ;;  %v3822_v37 = vld [vmem:[#allocation2 + $0x160] ss:$8 sps:$4 sm:$0xff]   ;;  %v3833_v6 = vld [vmem:[%s5174_s5 + $0x14] ss:$8 sps:$4 sm:$0xff]  }
 0x137   : > { %v861_v9 = vpack.c.bf16 %v762_v12, %v760_v8  ;;  %v813_v19 = vsel %vm798_vm5, %v810_v46, %v812_v58  ;;  %v815_v21 = vsel %vm798_vm5, %v812_v58, %v814_v60  ;;  %v817_v23 = vsel %vm798_vm5, %v814_v60, %v816_v49  ;;  %v3836_v8 = vld [vmem:[%s5174_s5 + $0x24] ss:$8 sps:$4 sm:$0xff]   ;;  %v3834_v12 = vld [vmem:[%s5174_s5 + $0x20] ss:$8 sps:$4 sm:$0xff]  }
 0x138   : > { %1230 = vmatprep.mubr.bf16.mxu1 %v858_v7  ;;  %v862_v29 = vpack.c.bf16 %v815_v21, %v813_v19  ;;  %v865_v5 = vpack.c.bf16 %v4585_v14, %v817_v23  ;;  %v764_v32 = vsel %vm745_vm6, %v761_v55, %v763_v25  ;;  %v863_v45 = vpack.c.bf16 %v4563_v39, %v706_v53  ;;  %v3482_v53 = vpop.f32.mrb[13].mxu1  ;;  %v3831_v7 = vld [vmem:[%s5174_s5 + $0x10] ss:$8 sps:$4 sm:$0xff]   ;;  %v3848_v19 = vld [vmem:[%s5174_s5 + $0x64] ss:$8 sps:$4 sm:$0xff]  }
 0x139   : > { %1231 = vmatmul.mubr.bf16.gmra.mrb[28].mxu1 %v857_v16  ;;  %v864_v33 = vpack.c.bf16 %v766_v34, %v764_v32  ;;  %v4609_v40 = vpack.c.bf16 %v4543_v17, %v4543_v17  ;;  %v742_v46 = vsel %vm689_vm4, %v4543_v17, 0.0  ;;  %v522_v54 = vpop.f32.mrb[14].mxu1  ;;  %v3837_v14 = vld [vmem:[%s5174_s5 + $0x30] ss:$8 sps:$4 sm:$0xff]   ;;  %v3842_v16 = vld [vmem:[%s5174_s5 + $0x44] ss:$8 sps:$4 sm:$0xff]  }
 0x13a   : > { %1240 = vmatprep.mubr.bf16.mxu1 %v861_v9  ;;  %1308 = vmatpush1.bf16.msra.mxu1 %v3816_v13  ;;  %v779_v48 = vrot.slane %v742_v46, 1  ;;  %v3483_v55 = vpop.f32.mrb[15].mxu1  ;;  %v832_v52 = vrot.slane %v742_v46, 2  ;;  %v3839_v13 = vld [vmem:[%s5174_s5 + $0x34] ss:$8 sps:$4 sm:$0xff]  }
 0x13b   : > { %1309 = vmatprep.subr.bf16.mxu1 %v3821_v18  ;;  %v527_v58 = vpop.f32.mrb[16].mxu1  ;;  %v3840_v9 = vld [vmem:[%s5174_s5 + $0x40] ss:$8 sps:$4 sm:$0xff]   ;;  %v3845_v18 = vld [vmem:[%s5174_s5 + $0x54] ss:$8 sps:$4 sm:$0xff]  }
 0x13c   : > { %v780_v39 = vsel %vm745_vm6, %v4595_v27, %v779_v48  ;;  %v3486_v60 = vpop.f32.mrb[17].mxu1  ;;  %v3846_v21 = vld [vmem:[%s5174_s5 + $0x60] ss:$8 sps:$4 sm:$0xff]   ;;  %v3851_v23 = vld [vmem:[%s5174_s5 + $0x74] ss:$8 sps:$4 sm:$0xff]  }
 0x13d   : > { %v4619_v49 = vpack.c.bf16 %v780_v39, %v780_v39  ;;  %v530_v61 = vpop.f32.mrb[18].mxu1  ;;  %v3849_v25 = vld [vmem:[%s5174_s5 + $0x70] ss:$8 sps:$4 sm:$0xff]  }
 0x13e   : > { %1310 = vmatpush1.bf16.msra.mxu1 %v3819_v15  ;;  %v3487_v4 = vpop.f32.mrb[19].mxu1  ;;  %v926_v15 = vld [vmem:[%s5173_s4] sm:$0x3] }
 0x13f   : > { %1311 = vmatprep.subr.bf16.mxu1 %v3824_v31  ;;  %v4706_v31 = vsub.s32 1, %v4457_v1 }
 0x141   : > { %1241 = vmatmul.mubr.bf16.gmra.mrb[32].mxu1 %v860_v38  ;;  %v4712_v34 = vrot.slane %v926_v15, %v4706_v31 }
 0x142   : > { %1250 = vmatprep.mubr.bf16.mxu1 %v864_v33  ;;  %1312 = vmatpush1.bf16.msra.mxu1 %v3822_v37 }
 0x143   : > { %1313 = vmatprep.subr.bf16.mxu1 %v3827_v42 }
 0x146   : > { %1314 = vmatpush1.bf16.msra.mxu1 %v3825_v43 }
 0x149   : > { %1251 = vmatmul.mubr.bf16.gmra.mrb[36].mxu1 %v863_v45 }
 0x14a   : > { %1260 = vmatprep.mubr.bf16.mxu1 %v4603_v44 }
 0x151   : > { %1261 = vmatmul.mubr.bf16.gmra.mrb[40].mxu1 %v4609_v40 }
 0x152   : > { %1270 = vmatprep.mubr.bf16.mxu1 %v4603_v44 }
 0x159   : > { %1271 = vmatmul.mubr.bf16.gmra.mrb[44].mxu1 %v4609_v40 }
 0x15a   : > { %1280 = vmatprep.mubr.bf16.mxu1 %v4603_v44 }
 0x161   : > { %1281 = vmatmul.mubr.bf16.gmra.mrb[48].mxu1 %v4609_v40 }
 0x162   : > { %1290 = vmatprep.mubr.bf16.mxu1 %v4619_v49 }
 0x169   : > { %1291 = vmatmul.mubr.bf16.gmra.mrb[52].mxu1 %v4609_v40 }
 0x16a   : > { %1331 = vmatprep.mubr.bf16.mxu1 %v4253_v62 }
 0x171   : > { %1332 = vmatmul.mubr.bf16.vlgmr.msra.gmra.mrb[20].mxu1 %v853_v56  ;;  %v833_v56 = vsel %vm798_vm5, %v4572_v51, %v832_v52 }
 0x172   : > { %1341 = vmatprep.mubr.bf16.mxu1 %v4253_v62  ;;  %v4648_v57 = vpack.c.bf16 %v833_v56, %v833_v56 }
 0x179   : > { %1342 = vmatmul.mubr.bf16.gmra.mrb[24].mxu1 %v856_v36  ;;  %v3828_v36 = vld [vmem:[%s5174_s5] ss:$8 sps:$4 sm:$0xff]  }
 0x17a   : > { %1351 = vmatprep.mubr.bf16.mxu1 %v4253_v62  ;;  %1674 = vmatpush1.bf16.msra.mxu0 %v3828_v36 }
 0x17b   : > { %1675 = vmatprep.subr.bf16.mxu0 %v3833_v6 }
 0x17e   : > { %1676 = vmatpush1.bf16.msra.mxu0 %v3831_v7 }
 0x17f   : > { %1677 = vmatprep.subr.bf16.mxu0 %v3836_v8 }
 0x181   : > { %1352 = vmatmul.mubr.bf16.gmra.mrb[28].mxu1 %v859_v20  ;;  %v3843_v20 = vld [vmem:[%s5174_s5 + $0x50] ss:$8 sps:$4 sm:$0xff]  }
 0x182   : > { %1361 = vmatprep.mubr.bf16.mxu1 %v4253_v62  ;;  %1678 = vmatpush1.bf16.msra.mxu0 %v3834_v12 }
 0x183   : > { %1679 = vmatprep.subr.bf16.mxu0 %v3839_v13 }
 0x186   : > { %1680 = vmatpush1.bf16.msra.mxu0 %v3837_v14 }
 0x187   : > { %1681 = vmatprep.subr.bf16.mxu0 %v3842_v16 }
 0x189   : > { %1362 = vmatmul.mubr.bf16.gmra.mrb[32].mxu1 %v862_v29  ;;  %v3854_v29 = vld [vmem:[#allocation2 + $0x184] ss:$8 sps:$4 sm:$0xff]  }
 0x18a   : > { %1371 = vmatprep.mubr.bf16.mxu1 %v4253_v62  ;;  %1682 = vmatpush1.bf16.msra.mxu0 %v3840_v9 }
 0x18b   : > { %1683 = vmatprep.subr.bf16.mxu0 %v3845_v18 }
 0x18e   : > { %1684 = vmatpush1.bf16.msra.mxu0 %v3843_v20 }
 0x18f   : > { %1685 = vmatprep.subr.bf16.mxu0 %v3848_v19 }
 0x191   : > { %1372 = vmatmul.mubr.bf16.gmra.mrb[36].mxu1 %v865_v5  ;;  %v4700_v5 = vsub.s32 0, %v4457_v1 }
 0x192   : > { %1381 = vmatprep.mubr.bf16.mxu1 %v4253_v62  ;;  %1686 = vmatpush1.bf16.msra.mxu0 %v3846_v21 }
 0x193   : > { %1687 = vmatprep.subr.bf16.mxu0 %v3851_v23  ;;  %v4709_v32 = vrot.slane %v926_v15, %v4700_v5 }
 0x196   : > { %1688 = vmatpush1.bf16.msra.mxu0 %v3849_v25 }
 0x197   : > { %2350 = vmatprep.subr.bf16.mxu0 %v3854_v29 }
 0x199   : > { %1382 = vmatmul.mubr.bf16.gmra.mrb[40].mxu1 %v4638_v26 }
 0x19a   : > { %1391 = vmatprep.mubr.bf16.mxu1 %v4253_v62 }
 0x1a1   : > { %1392 = vmatmul.mubr.bf16.gmra.mrb[44].mxu1 %v4638_v26 }
 0x1a2   : > { %1401 = vmatprep.mubr.bf16.mxu1 %v4253_v62 }
 0x1a9   : > { %1402 = vmatmul.mubr.bf16.gmra.mrb[48].mxu1 %v4638_v26 }
 0x1aa   : > { %1411 = vmatprep.mubr.bf16.mxu1 %v4253_v62 }
 0x1b1   : > { %1412 = vmatmul.mubr.bf16.gmra.mrb[52].mxu1 %v4648_v57 }
 0x244   : > { %v1333_v37 = vpop.f32.mrb[20].mxu1 }
 0x245   : > { %v3542_v38 = vadd.f32 %v1333_v37, %v4709_v32  ;;  %v1335_v42 = vpop.f32.mrb[21].mxu1 }
 0x246   : > { %v3543_v33 = vadd.f32 %v1335_v42, %v4712_v34  ;;  %v1337_v43 = vpop.f32.mrb[22].mxu1 }
 0x247   : > { %v3544_v45 = vadd.f32 %v1337_v43, %v4709_v32  ;;  %v1339_v46 = vpop.f32.mrb[23].mxu1 }
 0x248   : > { %v3283_v48 = vmul.f32 -1.442695, %v3543_v33  ;;  %v3545_v1 = vadd.f32 %v1339_v46, %v4712_v34 }
 0x24a   : > { %3932 = vpow2.f32 %v3283_v48  ;;  %v3284_v39 = vmul.f32 -1.442695, %v3545_v1 }
 0x24c   : > { %3934 = vpow2.f32 %v3284_v39  ;;  %v1343_v3 = vpop.f32.mrb[24].mxu1 }
 0x24d   : > { %v3546_v53 = vadd.f32 %v1343_v3, %v4709_v32  ;;  %v1345_v54 = vpop.f32.mrb[25].mxu1 }
 0x24e   : > { %v3547_v55 = vadd.f32 %v1345_v54, %v4712_v34  ;;  %v1347_v58 = vpop.f32.mrb[26].mxu1 }
 0x24f   : > { %v3548_v60 = vadd.f32 %v1347_v58, %v4709_v32  ;;  %v1349_v61 = vpop.f32.mrb[27].mxu1 }
 0x250   : > { %v3285_v4 = vmul.f32 -1.442695, %v3547_v55  ;;  %v3549_v52 = vadd.f32 %v1349_v61, %v4712_v34 }
 0x252   : > { %3936 = vpow2.f32 %v3285_v4  ;;  %v3286_v56 = vmul.f32 -1.442695, %v3549_v52 }
 0x254   : > { %v3933_v30 = vpop.eup %3932  ;;  %3938 = vpow2.f32 %v3286_v56  ;;  %v1353_v36 = vpop.f32.mrb[28].mxu1 }
 0x255   : > { %v1488_v6 = vadd.f32 1.0, %v3933_v30  ;;  %v3550_v7 = vadd.f32 %v1353_v36, %v4709_v32  ;;  %v1355_v8 = vpop.f32.mrb[29].mxu1  ;;  %3940 = vtanh.f32 %v3542_v38 }
 0x256   : > { %v3935_v12 = vpop.eup %3934  ;;  %v3551_v13 = vadd.f32 %v1355_v8, %v4712_v34  ;;  %v1357_v14 = vpop.f32.mrb[30].mxu1 }
 0x257   : > { %3942 = vrcp.f32 %v1488_v6  ;;  %v1489_v16 = vadd.f32 1.0, %v3935_v12  ;;  %v3552_v9 = vadd.f32 %v1357_v14, %v4709_v32  ;;  %v1359_v18 = vpop.f32.mrb[31].mxu1  ;;  %v3857_v14 = vld [vmem:[#allocation2 + $0x194] ss:$8 sps:$4 sm:$0xff]  }
 0x258   : > { %3944 = vtanh.f32 %v3544_v45  ;;  %v3287_v20 = vmul.f32 -1.442695, %v3551_v13  ;;  %v3553_v19 = vadd.f32 %v1359_v18, %v4712_v34 }
 0x259   : > { %3946 = vrcp.f32 %v1489_v16 }
 0x25a   : > { %3948 = vpow2.f32 %v3287_v20  ;;  %v3288_v21 = vmul.f32 -1.442695, %v3553_v19 }
 0x25c   : > { %v3937_v23 = vpop.eup %3936  ;;  %3950 = vpow2.f32 %v3288_v21  ;;  %v1363_v25 = vpop.f32.mrb[32].mxu1 }
 0x25d   : > { %v1490_v29 = vadd.f32 1.0, %v3937_v23  ;;  %v4727_v15 = vadd.f32 %v1363_v25, %v4709_v32  ;;  %v1365_v37 = vpop.f32.mrb[33].mxu1  ;;  %3952 = vtanh.f32 %v3546_v53 }
 0x25e   : > { %v3939_v38 = vpop.eup %3938  ;;  %v3555_v42 = vadd.f32 %v1365_v37, %v4712_v34  ;;  %v1367_v33 = vpop.f32.mrb[34].mxu1 }
 0x25f   : > { %3954 = vrcp.f32 %v1490_v29  ;;  %v1491_v43 = vadd.f32 1.0, %v3939_v38  ;;  %v4731_v45 = vadd.f32 %v1367_v33, %v4709_v32  ;;  %v1369_v46 = vpop.f32.mrb[35].mxu1  ;;  %v3941_v48 = vpop.eup %3940 }
 0x260   : > { %3956 = vtanh.f32 %v3548_v60  ;;  %v3289_v1 = vmul.f32 -1.442695, %v3555_v42  ;;  %v3557_v39 = vadd.f32 %v1369_v46, %v4712_v34  ;;  %v3852_v60 = vld [vmem:[#allocation2 + $0x180] ss:$8 sps:$4 sm:$0xff]   ;;  %v3860_v42 = vld [vmem:[#allocation2 + $0x1a4] ss:$8 sps:$4 sm:$0xff]  }
 0x261   : > { %v3943_v3 = vpop.eup %3942  ;;  %3958 = vrcp.f32 %v1491_v43 }
 0x262   : > { %v3945_v54 = vpop.eup %3944  ;;  %3960 = vpow2.f32 %v3289_v1  ;;  %v3290_v55 = vmul.f32 -1.442695, %v3557_v39  ;;  %v1539_v53 = vmul.f32 %v3943_v3, %v3941_v48  ;;  %v3858_v3 = vld [vmem:[#allocation2 + $0x1a0] ss:$8 sps:$4 sm:$0xff]  }
 0x263   : > { %v3947_v58 = vpop.eup %3946 }
 0x264   : > { %v3949_v61 = vpop.eup %3948  ;;  %3962 = vpow2.f32 %v3290_v55  ;;  %v1373_v4 = vpop.f32.mrb[36].mxu1  ;;  %v1540_v52 = vmul.f32 %v3947_v58, %v3945_v54 }
 0x265   : > { %v1492_v56 = vadd.f32 1.0, %v3949_v61  ;;  %v4735_v30 = vadd.f32 %v1373_v4, %v4709_v32  ;;  %v1375_v36 = vpop.f32.mrb[37].mxu1  ;;  %3964 = vtanh.f32 %v3550_v7  ;;  %v3855_v7 = vld [vmem:[#allocation2 + $0x190] ss:$8 sps:$4 sm:$0xff]   ;;  %v3863_v61 = vld [vmem:[#allocation2 + $0x1b4] ss:$8 sps:$4 sm:$0xff]  }
 0x266   : > { %v3951_v6 = vpop.eup %3950  ;;  %v3559_v8 = vadd.f32 %v1375_v36, %v4712_v34  ;;  %v1377_v12 = vpop.f32.mrb[38].mxu1  ;;  %v1556_v13 = vpack.c.bf16 %v1540_v52, %v1539_v53 }
 0x267   : > { %3966 = vrcp.f32 %v1492_v56  ;;  %v1493_v16 = vadd.f32 1.0, %v3951_v6  ;;  %v4739_v18 = vadd.f32 %v1377_v12, %v4709_v32  ;;  %v1379_v20 = vpop.f32.mrb[39].mxu1  ;;  %v3953_v19 = vpop.eup %3952 }
 0x268   : > { %3968 = vtanh.f32 %v3552_v9  ;;  %v3291_v21 = vmul.f32 -1.442695, %v3559_v8  ;;  %v3561_v23 = vadd.f32 %v1379_v20, %v4712_v34  ;;  %1706 = vmatmul.mubr.bf16.vlgmr.msra.gmra.mrb[16].mxu0 %v1556_v13  ;;  %v3861_v8 = vld [vmem:[#allocation2 + $0x1b0] ss:$8 sps:$4 sm:$0xff]  }
 0x269   : > { %v3955_v25 = vpop.eup %3954  ;;  %3970 = vrcp.f32 %v1493_v16  ;;  %1715 = vmatprep.mubr.bf16.mxu0 %v4253_v62  ;;  %2351 = vmatpush1.bf16.msra.mxu0 %v3852_v60  ;;  %v3866_v16 = vld [vmem:[#allocation2 + $0x1c4] ss:$8 sps:$4 sm:$0xff]  }
 0x26a   : > { %v3957_v29 = vpop.eup %3956  ;;  %3972 = vpow2.f32 %v3291_v21  ;;  %v3292_v37 = vmul.f32 -1.442695, %v3561_v23  ;;  %v1541_v38 = vmul.f32 %v3955_v25, %v3953_v19  ;;  %2352 = vmatprep.subr.bf16.mxu0 %v3857_v14 }
 0x26b   : > { %v3959_v33 = vpop.eup %3958 }
 0x26c   : > { %v3961_v43 = vpop.eup %3960  ;;  %3974 = vpow2.f32 %v3292_v37  ;;  %v1383_v9 = vpop.f32.mrb[40].mxu1  ;;  %v1542_v46 = vmul.f32 %v3959_v33, %v3957_v29  ;;  %v3864_v29 = vld [vmem:[#allocation2 + $0x1c0] ss:$8 sps:$4 sm:$0xff]  }
 0x26d   : > { %v1494_v48 = vadd.f32 1.0, %v3961_v43  ;;  %v4744_v1 = vadd.f32 %v1383_v9, %v4709_v32  ;;  %v1385_v39 = vpop.f32.mrb[41].mxu1  ;;  %2353 = vmatpush1.bf16.msra.mxu0 %v3855_v7  ;;  %3976 = vtanh.f32 %v4727_v15  ;;  %v3869_v43 = vld [vmem:[#allocation2 + $0x1d4] ss:$8 sps:$4 sm:$0xff]  }
 0x26e   : > { %v3963_v54 = vpop.eup %3962  ;;  %v3563_v55 = vadd.f32 %v1385_v39, %v4712_v34  ;;  %v1387_v53 = vpop.f32.mrb[42].mxu1  ;;  %v1557_v58 = vpack.c.bf16 %v1542_v46, %v1541_v38  ;;  %2354 = vmatprep.subr.bf16.mxu0 %v3860_v42 }
 0x26f   : > { %3978 = vrcp.f32 %v1494_v48  ;;  %v1495_v4 = vadd.f32 1.0, %v3963_v54  ;;  %v4749_v52 = vadd.f32 %v1387_v53, %v4709_v32  ;;  %v1389_v56 = vpop.f32.mrb[43].mxu1  ;;  %v3965_v36 = vpop.eup %3964 }
 0x270   : > { %3980 = vtanh.f32 %v4731_v45  ;;  %v3293_v60 = vmul.f32 -1.442695, %v3563_v55  ;;  %v3565_v6 = vadd.f32 %v1389_v56, %v4712_v34  ;;  %1716 = vmatmul.mubr.bf16.gmra.mrb[20].mxu0 %v1557_v58  ;;  %v3867_v55 = vld [vmem:[#allocation2 + $0x1d0] ss:$8 sps:$4 sm:$0xff]  }
 0x271   : > { %v3967_v15 = vpop.eup %3966  ;;  %3982 = vrcp.f32 %v1495_v4  ;;  %1725 = vmatprep.mubr.bf16.mxu0 %v4253_v62  ;;  %2355 = vmatpush1.bf16.msra.mxu0 %v3858_v3  ;;  %v3872_v4 = vld [vmem:[#allocation2 + $0x1e4] ss:$8 sps:$4 sm:$0xff]  }
 0x272   : > { %v3969_v12 = vpop.eup %3968  ;;  %3984 = vpow2.f32 %v3293_v60  ;;  %v3294_v13 = vmul.f32 -1.442695, %v3565_v6  ;;  %v1543_v14 = vmul.f32 %v3967_v15, %v3965_v36  ;;  %2356 = vmatprep.subr.bf16.mxu0 %v3863_v61 }
 0x273   : > { %v3971_v20 = vpop.eup %3970 }
 0x274   : > { %v3973_v19 = vpop.eup %3972  ;;  %3986 = vpow2.f32 %v3294_v13  ;;  %v1393_v45 = vpop.f32.mrb[44].mxu1  ;;  %v1544_v21 = vmul.f32 %v3971_v20, %v3969_v12  ;;  %v3870_v12 = vld [vmem:[#allocation2 + $0x1e0] ss:$8 sps:$4 sm:$0xff]  }
 0x275   : > { %v1496_v23 = vadd.f32 1.0, %v3973_v19  ;;  %v4755_v25 = vadd.f32 %v1393_v45, %v4709_v32  ;;  %v1395_v7 = vpop.f32.mrb[45].mxu1  ;;  %2357 = vmatpush1.bf16.msra.mxu0 %v3861_v8  ;;  %3988 = vtanh.f32 %v4735_v30  ;;  %v3875_v19 = vld [vmem:[#allocation2 + $0x1f4] ss:$8 sps:$4 sm:$0xff]  }
 0x276   : > { %v3975_v37 = vpop.eup %3974  ;;  %v3567_v38 = vadd.f32 %v1395_v7, %v4712_v34  ;;  %v1397_v42 = vpop.f32.mrb[46].mxu1  ;;  %v1558_v33 = vpack.c.bf16 %v1544_v21, %v1543_v14  ;;  %2358 = vmatprep.subr.bf16.mxu0 %v3866_v16 }
 0x277   : > { %3990 = vrcp.f32 %v1496_v23  ;;  %v1497_v9 = vadd.f32 1.0, %v3975_v37  ;;  %v4760_v46 = vadd.f32 %v1397_v42, %v4709_v32  ;;  %v1399_v48 = vpop.f32.mrb[47].mxu1  ;;  %v3977_v39 = vpop.eup %3976 }
 0x278   : > { %3992 = vtanh.f32 %v4739_v18  ;;  %v3295_v3 = vmul.f32 -1.442695, %v3567_v38  ;;  %v3569_v54 = vadd.f32 %v1399_v48, %v4712_v34  ;;  %1726 = vmatmul.mubr.bf16.gmra.mrb[24].mxu0 %v1558_v33  ;;  %v3873_v38 = vld [vmem:[#allocation2 + $0x1f0] ss:$8 sps:$4 sm:$0xff]  }
 0x279   : > { %v3979_v30 = vpop.eup %3978  ;;  %3994 = vrcp.f32 %v1497_v9  ;;  %1735 = vmatprep.mubr.bf16.mxu0 %v4253_v62  ;;  %2359 = vmatpush1.bf16.msra.mxu0 %v3864_v29  ;;  %v3878_v9 = vld [vmem:[#allocation2 + $0x204] ss:$8 sps:$4 sm:$0xff]  }
 0x27a   : > { %v3981_v53 = vpop.eup %3980  ;;  %3996 = vpow2.f32 %v3295_v3  ;;  %v3296_v58 = vmul.f32 -1.442695, %v3569_v54  ;;  %v1545_v61 = vmul.f32 %v3979_v30, %v3977_v39  ;;  %2360 = vmatprep.subr.bf16.mxu0 %v3869_v43 }
 0x27b   : > { %v3983_v56 = vpop.eup %3982 }
 0x27c   : > { %v3985_v36 = vpop.eup %3984  ;;  %3998 = vpow2.f32 %v3296_v58  ;;  %v1403_v18 = vpop.f32.mrb[48].mxu1  ;;  %v1546_v60 = vmul.f32 %v3983_v56, %v3981_v53  ;;  %v3876_v53 = vld [vmem:[#allocation2 + $0x200] ss:$8 sps:$4 sm:$0xff]  }
 0x27d   : > { %v1498_v6 = vadd.f32 1.0, %v3985_v36  ;;  %v4766_v15 = vadd.f32 %v1403_v18, %v4709_v32  ;;  %v1405_v8 = vpop.f32.mrb[49].mxu1  ;;  %2361 = vmatpush1.bf16.msra.mxu0 %v3867_v55  ;;  %4000 = vtanh.f32 %v4744_v1  ;;  %v3881_v36 = vld [vmem:[#allocation2 + $0x214] ss:$8 sps:$4 sm:$0xff]  }
 0x27e   : > { %v3987_v13 = vpop.eup %3986  ;;  %v3571_v14 = vadd.f32 %v1405_v8, %v4712_v34  ;;  %v1407_v16 = vpop.f32.mrb[50].mxu1  ;;  %v1559_v20 = vpack.c.bf16 %v1546_v60, %v1545_v61  ;;  %2362 = vmatprep.subr.bf16.mxu0 %v3872_v4 }
 0x27f   : > { %4002 = vrcp.f32 %v1498_v6  ;;  %v1499_v45 = vadd.f32 1.0, %v3987_v13  ;;  %v4771_v21 = vadd.f32 %v1407_v16, %v4709_v32  ;;  %v1409_v23 = vpop.f32.mrb[51].mxu1  ;;  %v3989_v7 = vpop.eup %3988  ;;  %v3884_v13 = vld [vmem:[#allocation2 + $0x224] ss:$8 sps:$4 sm:$0xff]  }
 0x280   : > { %4004 = vtanh.f32 %v4749_v52  ;;  %v3297_v29 = vmul.f32 -1.442695, %v3571_v14  ;;  %v3573_v37 = vadd.f32 %v1409_v23, %v4712_v34  ;;  %1736 = vmatmul.mubr.bf16.gmra.mrb[28].mxu0 %v1559_v20 }
 0x281   : > { %v3991_v1 = vpop.eup %3990  ;;  %4006 = vrcp.f32 %v1499_v45  ;;  %1745 = vmatprep.mubr.bf16.mxu0 %v4253_v62  ;;  %2363 = vmatpush1.bf16.msra.mxu0 %v3870_v12  ;;  %v3882_v45 = vld [vmem:[#allocation2 + $0x220] ss:$8 sps:$4 sm:$0xff]  }
 0x282   : > { %v3993_v42 = vpop.eup %3992  ;;  %4008 = vpow2.f32 %v3297_v29  ;;  %v3298_v33 = vmul.f32 -1.442695, %v3573_v37  ;;  %v1547_v43 = vmul.f32 %v3991_v1, %v3989_v7  ;;  %2364 = vmatprep.subr.bf16.mxu0 %v3875_v19 }
 0x283   : > { %v3995_v48 = vpop.eup %3994 }
 0x284   : > { %v3997_v39 = vpop.eup %3996  ;;  %4010 = vpow2.f32 %v3298_v33  ;;  %v1413_v52 = vpop.f32.mrb[52].mxu1  ;;  %v1548_v3 = vmul.f32 %v3995_v48, %v3993_v42 }
 0x285   : > { %v1500_v54 = vadd.f32 1.0, %v3997_v39  ;;  %v3574_v30 = vadd.f32 %v1413_v52, %v4709_v32  ;;  %v1415_v55 = vpop.f32.mrb[53].mxu1  ;;  %2365 = vmatpush1.bf16.msra.mxu0 %v3873_v38  ;;  %4012 = vtanh.f32 %v4755_v25  ;;  %v3879_v25 = vld [vmem:[#allocation2 + $0x210] ss:$8 sps:$4 sm:$0xff]  }
 0x286   : > { %v3999_v58 = vpop.eup %3998  ;;  %v3575_v61 = vadd.f32 %v1415_v55, %v4712_v34  ;;  %v1417_v4 = vpop.f32.mrb[54].mxu1  ;;  %v1560_v56 = vpack.c.bf16 %v1548_v3, %v1547_v43  ;;  %2366 = vmatprep.subr.bf16.mxu0 %v3878_v9 }
 0x287   : > { %4014 = vrcp.f32 %v1500_v54  ;;  %v1501_v18 = vadd.f32 1.0, %v3999_v58  ;;  %v1418_v60 = vpop.f32.mrb[55].mxu1  ;;  %v4001_v6 = vpop.eup %4000 }
 0x288   : > { %4016 = vtanh.f32 %v4760_v46  ;;  %v3299_v8 = vmul.f32 -1.442695, %v3575_v61  ;;  %1746 = vmatmul.mubr.bf16.gmra.mrb[32].mxu0 %v1560_v56  ;;  %v3885_v56 = vld [vmem:[#allocation2 + $0x230] ss:$8 sps:$4 sm:$0xff]   ;;  %v3893_v60 = vld [vmem:[#allocation2 + $0x254] ss:$8 sps:$4 sm:$0xff]  }
 0x289   : > { %v4003_v32 = vpop.eup %4002  ;;  %4018 = vrcp.f32 %v1501_v18  ;;  %1755 = vmatprep.mubr.bf16.mxu0 %v4253_v62  ;;  %2367 = vmatpush1.bf16.msra.mxu0 %v3876_v53  ;;  %v3888_v18 = vld [vmem:[#allocation2 + $0x240] ss:$8 sps:$4 sm:$0xff]  }
 0x28a   : > { %v4005_v12 = vpop.eup %4004  ;;  %4020 = vpow2.f32 %v3299_v8  ;;  %v1549_v34 = vmul.f32 %v4003_v32, %v4001_v6  ;;  %2368 = vmatprep.subr.bf16.mxu0 %v3881_v36  ;;  %v3890_v36 = vld [vmem:[#allocation2 + $0x244] ss:$8 sps:$4 sm:$0xff]   ;;  %v3891_v6 = vld [vmem:[#allocation2 + $0x250] ss:$8 sps:$4 sm:$0xff]   ;;  %v3894_v32 = vld [vmem:[#allocation2 + $0x260] ss:$8 sps:$4 sm:$0xff]  }
 0x28b   : > { %v4007_v14 = vpop.eup %4006  ;;  %4022 = vtanh.f32 %v4766_v15  ;;  %v3896_v8 = vld [vmem:[#allocation2 + $0x264] ss:$8 sps:$4 sm:$0xff]  }
 0x28c   : > { %v4009_v16 = vpop.eup %4008  ;;  %v1550_v20 = vmul.f32 %v4007_v14, %v4005_v12  ;;  %v3897_v12 = vld [vmem:[#allocation2 + $0x270] ss:$8 sps:$4 sm:$0xff]  }
 0x28d   : > { %v1502_v19 = vadd.f32 1.0, %v4009_v16  ;;  %2369 = vmatpush1.bf16.msra.mxu0 %v3879_v25  ;;  %v3899_v25 = vld [vmem:[#allocation2 + $0x274] ss:$8 sps:$4 sm:$0xff]  }
 0x28e   : > { %v4011_v46 = vpop.eup %4010  ;;  %v1561_v23 = vpack.c.bf16 %v1550_v20, %v1549_v34  ;;  %2370 = vmatprep.subr.bf16.mxu0 %v3884_v13  ;;  %v3902_v34 = vld [vmem:[#allocation2 + $0x284] ss:$8 sps:$4 sm:$0xff]   ;;  %v1581_v13 = vld [vmem:[%s5175_s6] sm:$0x3] }
 0x28f   : > { %4024 = vrcp.f32 %v1502_v19  ;;  %v1503_v7 = vadd.f32 1.0, %v4011_v46  ;;  %v4013_v29 = vpop.eup %4012  ;;  %v4790_v14 = vrot.slane %v1581_v13, %v4700_v5  ;;  %v4793_v16 = vrot.slane %v1581_v13, %v4706_v31 }
 0x290   : > { %4026 = vtanh.f32 %v4771_v21  ;;  %1756 = vmatmul.mubr.bf16.gmra.mrb[36].mxu0 %v1561_v23 }
 0x291   : > { %v4015_v37 = vpop.eup %4014  ;;  %4028 = vrcp.f32 %v1503_v7  ;;  %1765 = vmatprep.mubr.bf16.mxu0 %v4253_v62  ;;  %2371 = vmatpush1.bf16.msra.mxu0 %v3882_v45 }
 0x292   : > { %v4017_v1 = vpop.eup %4016  ;;  %v1551_v38 = vmul.f32 %v4015_v37, %v4013_v29  ;;  %4030 = vtanh.f32 %v3574_v30  ;;  %v3887_v30 = vld [vmem:[#allocation2 + $0x234] ss:$8 sps:$4 sm:$0xff]  }
 0x293   : > { %v4019_v42 = vpop.eup %4018  ;;  %2372 = vmatprep.subr.bf16.mxu0 %v3887_v30 }
 0x294   : > { %v4021_v33 = vpop.eup %4020  ;;  %v1552_v43 = vmul.f32 %v4019_v42, %v4017_v1 }
 0x295   : > { %v1504_v9 = vadd.f32 1.0, %v4021_v33  ;;  %v4023_v48 = vpop.eup %4022  ;;  %2373 = vmatpush1.bf16.msra.mxu0 %v3885_v56 }
 0x296   : > { %v1562_v15 = vpack.c.bf16 %v1552_v43, %v1551_v38  ;;  %2374 = vmatprep.subr.bf16.mxu0 %v3890_v36 }
 0x297   : > { %4032 = vrcp.f32 %v1504_v9 }
 0x298   : > { %1766 = vmatmul.mubr.bf16.gmra.mrb[40].mxu0 %v1562_v15 }
 0x299   : > { %v4025_v39 = vpop.eup %4024  ;;  %1775 = vmatprep.mubr.bf16.mxu0 %v4253_v62  ;;  %2375 = vmatpush1.bf16.msra.mxu0 %v3888_v18 }
 0x29a   : > { %v4027_v21 = vpop.eup %4026  ;;  %v1553_v52 = vmul.f32 %v4025_v39, %v4023_v48  ;;  %2376 = vmatprep.subr.bf16.mxu0 %v3893_v60 }
 0x29b   : > { %v4029_v3 = vpop.eup %4028 }
 0x29c   : > { %v1554_v54 = vmul.f32 %v4029_v3, %v4027_v21  ;;  %v4031_v53 = vpop.eup %4030 }
 0x29d   : > { %2377 = vmatpush1.bf16.msra.mxu0 %v3891_v6 }
 0x29e   : > { %v1563_v55 = vpack.c.bf16 %v1554_v54, %v1553_v52  ;;  %2378 = vmatprep.subr.bf16.mxu0 %v3896_v8 }
 0x2a0   : > { %1776 = vmatmul.mubr.bf16.gmra.mrb[44].mxu0 %v1563_v55 }
 0x2a1   : > { %v4033_v58 = vpop.eup %4032  ;;  %1785 = vmatprep.mubr.bf16.mxu0 %v4253_v62  ;;  %2379 = vmatpush1.bf16.msra.mxu0 %v3894_v32 }
 0x2a2   : > { %v1555_v61 = vmul.f32 %v4033_v58, %v4031_v53  ;;  %2380 = vmatprep.subr.bf16.mxu0 %v3899_v25 }
 0x2a4   : > { %v1564_v4 = vpack.c.bf16 %v1555_v61, %v1555_v61 }
 0x2a5   : > { %2381 = vmatpush1.bf16.msra.mxu0 %v3897_v12 }
 0x2a6   : > { %2471 = vmatprep.subr.bf16.mxu0 %v3902_v34 }
 0x2a8   : > { %1786 = vmatmul.mubr.bf16.gmra.mrb[48].mxu0 %v1564_v4 }
 0x33b   : > { %v1707_v20 = vpop.f32.mrb[16].mxu0 }
 0x33c   : > { %v1708_v19 = vadd.f32 %v1707_v20, %v4790_v14  ;;  %v1709_v45 = vpop.f32.mrb[17].mxu0 }
 0x33d   : > { %v4797_v46 = vadd.f32 %v1709_v45, %v4793_v16  ;;  %v1711_v23 = vpop.f32.mrb[18].mxu0 }
 0x33e   : > { %v1794_v7 = vadd.f32 %v1708_v19, %v4471_v10  ;;  %v1712_v29 = vadd.f32 %v1711_v23, %v4790_v14  ;;  %v1713_v37 = vpop.f32.mrb[19].mxu0 }
 0x33f   : > { %v4802_v1 = vadd.f32 %v1713_v37, %v4793_v16 }
 0x340   : > { %v1811_v38 = vsel %vm570_vm3, %v1794_v7, 0.0  ;;  %v1795_v42 = vadd.f32 %v1712_v29, %v4474_v11 }
 0x341   : > { %v1862_v33 = vrot.slane %v1811_v38, 7  ;;  %v3900_v38 = vld [vmem:[#allocation2 + $0x280] ss:$8 sps:$4 sm:$0xff]  }
 0x342   : > { %v1863_v43 = vrot.slane %v1795_v42, 7 }
 0x343   : > { %v1913_v9 = vsel %vm689_vm4, 0.0, %v1862_v33  ;;  %v1717_v15 = vpop.f32.mrb[20].mxu0 }
 0x344   : > { %v1969_v48 = vrot.slane %v1913_v9, 2  ;;  %v1864_v39 = vsel %vm689_vm4, %v1862_v33, %v1863_v43  ;;  %v1718_v10 = vadd.f32 %v1717_v15, %v4790_v14  ;;  %v1719_v21 = vpop.f32.mrb[21].mxu0  ;;  %v1917_v52 = vrot.slane %v1913_v9, 1  ;;  %v3905_v9 = vld [vmem:[#allocation2 + $0x294] ss:$8 sps:$4 sm:$0xff]  }
 0x345   : > { %v1970_v3 = vrot.slane %v1864_v39, 2  ;;  %v3367_v54 = vpack.c.bf16 %v1864_v39, %v1862_v33  ;;  %v4811_v55 = vadd.f32 %v1719_v21, %v4793_v16  ;;  %v1721_v2 = vpop.f32.mrb[22].mxu0  ;;  %v1918_v53 = vrot.slane %v1864_v39, 1 }
 0x346   : > { %v1796_v11 = vadd.f32 %v1718_v10, %v4481_v22  ;;  %v1722_v58 = vadd.f32 %v1721_v2, %v4790_v14  ;;  %v1723_v61 = vpop.f32.mrb[23].mxu0 }
 0x347   : > { %v4816_v4 = vadd.f32 %v1723_v61, %v4793_v16  ;;  %v1919_v30 = vsel %vm745_vm6, %v1917_v52, %v1918_v53  ;;  %v4820_v56 = vsel %vm798_vm5, %v1969_v48, %v1970_v3 }
 0x348   : > { %v1865_v36 = vrot.slane %v1796_v11, 7  ;;  %v1797_v18 = vadd.f32 %v1722_v58, %v4489_v28  ;;  %v3908_v11 = vld [vmem:[#allocation2 + $0x2a4] ss:$8 sps:$4 sm:$0xff]  }
 0x34a   : > { %v1866_v60 = vsel %vm689_vm4, %v1863_v43, %v1865_v36  ;;  %v1867_v6 = vrot.slane %v1797_v18, 7 }
 0x34b   : > { %v1972_v8 = vrot.slane %v1866_v60, 2  ;;  %v1727_v32 = vpop.f32.mrb[24].mxu0  ;;  %v1920_v22 = vrot.slane %v1866_v60, 1 }
 0x34c   : > { %v1868_v25 = vsel %vm689_vm4, %v1865_v36, %v1867_v6  ;;  %v1728_v12 = vadd.f32 %v1727_v32, %v4790_v14  ;;  %v1729_v34 = vpop.f32.mrb[25].mxu0 }
 0x34d   : > { %v4827_v13 = vadd.f32 %v1729_v34, %v4793_v16  ;;  %v1731_v20 = vpop.f32.mrb[26].mxu0  ;;  %v1921_v19 = vsel %vm745_vm6, %v1918_v53, %v1920_v22  ;;  %v1922_v45 = vrot.slane %v1868_v25, 1  ;;  %v2024_v23 = vpack.c.bf16 %v1868_v25, %v1866_v60 }
 0x34e   : > { %v1798_v28 = vadd.f32 %v1728_v12, %v4508_v47  ;;  %v1732_v7 = vadd.f32 %v1731_v20, %v4790_v14  ;;  %v1733_v29 = vpop.f32.mrb[27].mxu0  ;;  %v2022_v37 = vpack.c.bf16 %v1921_v19, %v1919_v30  ;;  %v4833_v42 = vsel %vm798_vm5, %v1970_v3, %v1972_v8  ;;  %v3903_v3 = vld [vmem:[#allocation2 + $0x290] ss:$8 sps:$4 sm:$0xff]   ;;  %v3911_v19 = vld [vmem:[#allocation2 + $0x2b4] ss:$8 sps:$4 sm:$0xff]  }
 0x34f   : > { %v4836_v33 = vadd.f32 %v1733_v29, %v4793_v16  ;;  %v1923_v43 = vsel %vm745_vm6, %v1920_v22, %v1922_v45  ;;  %v2023_v15 = vpack.c.bf16 %v4833_v42, %v4820_v56  ;;  %v1974_v48 = vrot.slane %v1868_v25, 2  ;;  %v3906_v25 = vld [vmem:[#allocation2 + $0x2a0] ss:$8 sps:$4 sm:$0xff]  }
 0x350   : > { %v1869_v39 = vrot.slane %v1798_v28, 7  ;;  %v1799_v47 = vadd.f32 %v1732_v7, %v4525_v59  ;;  %2382 = vmatprep.mubr.bf16.mxu0 %v2022_v37  ;;  %v3316_v56 = vld [vmem:[%s5173_s4 + $0x2] sm:$0x3] }
 0x351   : > { %3368 = vmatmul.mubr.msk.bf16.vlgmr.msra.gmra.mrb[52].mxu0 %vm4510_vm9, %v3367_v54  ;;  %v4845_v10 = vsel %vm798_vm5, %v1972_v8, %v1974_v48  ;;  %v4995_v42 = vrot.slane %v3316_v56, %v4700_v5 }
 0x352   : > { %v4848_v21 = vsel %vm689_vm4, %v1867_v6, %v1869_v39  ;;  %v1871_v52 = vrot.slane %v1799_v47, 7  ;;  %2472 = vmatpush1.bf16.msra.mxu0 %v3900_v38 }
 0x353   : > { %v1737_v2 = vpop.f32.mrb[28].mxu0  ;;  %v1924_v53 = vrot.slane %v4848_v21, 1  ;;  %2473 = vmatprep.subr.bf16.mxu0 %v3905_v9  ;;  %v1976_v59 = vrot.slane %v4848_v21, 2  ;;  %v3924_v9 = vld [vmem:[%s5174_s5 + $0x80] ss:$8 sps:$4 sm:$0xff]  }
 0x354   : > { %v1872_v58 = vsel %vm689_vm4, %v1869_v39, %v1871_v52  ;;  %v1738_v50 = vadd.f32 %v1737_v2, %v4790_v14  ;;  %v1739_v54 = vpop.f32.mrb[29].mxu0  ;;  %3488 = vmatprep.subr.bf16.mxu1 %v3924_v9 }
 0x355   : > { %v4855_v61 = vadd.f32 %v1739_v54, %v4793_v16  ;;  %v1741_v30 = vpop.f32.mrb[30].mxu0  ;;  %v1925_v36 = vsel %vm745_vm6, %v1922_v45, %v1924_v53  ;;  %v1926_v18 = vrot.slane %v1872_v58, 1  ;;  %v2027_v60 = vpack.c.bf16 %v1872_v58, %v4848_v21  ;;  %3489 = vmatpush3.bf16.msra.mxu1 %v3924_v9 }
 0x356   : > { %v1800_v6 = vadd.f32 %v1738_v50, %v4548_v24  ;;  %v1742_v8 = vadd.f32 %v1741_v30, %v4790_v14  ;;  %v1743_v32 = vpop.f32.mrb[31].mxu0  ;;  %v2025_v22 = vpack.c.bf16 %v1925_v36, %v1923_v43  ;;  %2474 = vmatpush1.bf16.msra.mxu0 %v3903_v3  ;;  %v4862_v12 = vsel %vm798_vm5, %v1974_v48, %v1976_v59  ;;  %v3909_v43 = vld [vmem:[#allocation2 + $0x2b0] ss:$8 sps:$4 sm:$0xff]   ;;  %v3912_v30 = vld [vmem:[#allocation2 + $0x2c0] ss:$8 sps:$4 sm:$0xff]  }
 0x357   : > { %v4865_v34 = vadd.f32 %v1743_v32, %v4793_v16  ;;  %v1927_v20 = vsel %vm745_vm6, %v1924_v53, %v1926_v18  ;;  %2475 = vmatprep.subr.bf16.mxu0 %v3908_v11  ;;  %v2026_v45 = vpack.c.bf16 %v4862_v12, %v4845_v10  ;;  %v1978_v24 = vrot.slane %v1872_v58, 2 }
 0x358   : > { %v1873_v28 = vrot.slane %v1800_v6, 7  ;;  %v1801_v7 = vadd.f32 %v1742_v8, %v4566_v41  ;;  %2392 = vmatprep.mubr.bf16.mxu0 %v2025_v22  ;;  %v3914_v41 = vld [vmem:[#allocation2 + $0x2c4] ss:$8 sps:$4 sm:$0xff]  }
 0x359   : > { %2393 = vmatmul.mubr.bf16.gmra.mrb[56].mxu0 %v2024_v23  ;;  %v4872_v29 = vsel %vm798_vm5, %v1976_v59, %v1978_v24 }
 0x35a   : > { %v4875_v37 = vsel %vm689_vm4, %v1871_v52, %v1873_v28  ;;  %v1875_v38 = vrot.slane %v1801_v7, 7  ;;  %2476 = vmatpush1.bf16.msra.mxu0 %v3906_v25  ;;  %v3920_v7 = vld [vmem:[#allocation2 + $0x2e4] ss:$8 sps:$4 sm:$0xff]  }
 0x35b   : > { %v1747_v48 = vpop.f32.mrb[32].mxu0  ;;  %v1928_v39 = vrot.slane %v4875_v37, 1  ;;  %2477 = vmatprep.subr.bf16.mxu0 %v3911_v19  ;;  %v1980_v23 = vrot.slane %v4875_v37, 2 }
 0x35c   : > { %v1876_v47 = vsel %vm689_vm4, %v1873_v28, %v1875_v38  ;;  %v1748_v21 = vadd.f32 %v1747_v48, %v4790_v14  ;;  %v1749_v52 = vpop.f32.mrb[33].mxu0 }
 0x35d   : > { %v4885_v3 = vadd.f32 %v1749_v52, %v4793_v16  ;;  %v1751_v2 = vpop.f32.mrb[34].mxu0  ;;  %v1929_v53 = vsel %vm745_vm6, %v1926_v18, %v1928_v39  ;;  %v1930_v11 = vrot.slane %v1876_v47, 1  ;;  %v2030_v59 = vpack.c.bf16 %v1876_v47, %v4875_v37  ;;  %v3917_v18 = vld [vmem:[#allocation2 + $0x2d4] ss:$8 sps:$4 sm:$0xff]  }
 0x35e   : > { %v1802_v58 = vadd.f32 %v1748_v21, %v4532_v63  ;;  %v1753_v50 = vpop.f32.mrb[35].mxu0  ;;  %v2028_v54 = vpack.c.bf16 %v1929_v53, %v1927_v20  ;;  %2478 = vmatpush1.bf16.msra.mxu0 %v3909_v43  ;;  %v4891_v14 = vsel %vm798_vm5, %v1978_v24, %v1980_v23  ;;  %v1982_v36 = vrot.slane %v1876_v47, 2  ;;  %v3915_v20 = vld [vmem:[#allocation2 + $0x2d0] ss:$8 sps:$4 sm:$0xff]  }
 0x35f   : > { %v4894_v6 = vadd.f32 %v1753_v50, %v4793_v16  ;;  %v1931_v8 = vsel %vm745_vm6, %v1928_v39, %v1930_v11  ;;  %2479 = vmatprep.subr.bf16.mxu0 %v3914_v41  ;;  %v2029_v32 = vpack.c.bf16 %v4891_v14, %v4872_v29 }
 0x360   : > { %v1819_v63 = vsel %vm595_vm10, %v1802_v58, 0.0  ;;  %2402 = vmatprep.mubr.bf16.mxu0 %v2028_v54  ;;  %v4902_v22 = vsel %vm798_vm5, %v1980_v23, %v1982_v36  ;;  %v3918_v58 = vld [vmem:[#allocation2 + $0x2e0] ss:$8 sps:$4 sm:$0xff]   ;;  %v3923_v54 = vld [vmem:[#allocation2 + $0x2f4] ss:$8 sps:$4 sm:$0xff]  }
 0x361   : > { %v1877_v25 = vrot.slane %v1819_v63, 7  ;;  %2403 = vmatmul.mubr.bf16.gmra.mrb[60].mxu0 %v2027_v60 }
 0x362   : > { %2480 = vmatpush1.bf16.msra.mxu0 %v3912_v30 }
 0x363   : > { %v1878_v19 = vsel %vm689_vm4, %v1875_v38, %v1877_v25  ;;  %v1880_v24 = vsel %vm689_vm4, %v1877_v25, %v4543_v17  ;;  %v1757_v28 = vpop.f32.mrb[36].mxu0  ;;  %2481 = vmatprep.subr.bf16.mxu0 %v3917_v18 }
 0x364   : > { %v1759_v37 = vpop.f32.mrb[37].mxu0  ;;  %v1932_v43 = vrot.slane %v1878_v19, 1  ;;  %v1934_v35 = vrot.slane %v1880_v24, 1  ;;  %v2033_v9 = vpack.c.bf16 %v1880_v24, %v1878_v19  ;;  %v1984_v48 = vrot.slane %v1878_v19, 2 }
 0x365   : > { %v4908_v39 = vadd.f32 %v1759_v37, %v4793_v16  ;;  %v1761_v41 = vpop.f32.mrb[38].mxu0  ;;  %v1986_v60 = vrot.slane %v1880_v24, 2 }
 0x366   : > { %v1763_v23 = vpop.f32.mrb[39].mxu0  ;;  %v1933_v47 = vsel %vm745_vm6, %v1930_v11, %v1932_v43  ;;  %v1935_v38 = vsel %vm745_vm6, %v1932_v43, %v1934_v35  ;;  %v1937_v17 = vsel %vm745_vm6, %v1934_v35, %v4595_v27  ;;  %2482 = vmatpush1.bf16.msra.mxu0 %v3915_v20  ;;  %v1985_v21 = vsel %vm798_vm5, %v1982_v36, %v1984_v48  ;;  %v3921_v36 = vld [vmem:[#allocation2 + $0x2f0] ss:$8 sps:$4 sm:$0xff]  }
 0x367   : > { %v4916_v52 = vadd.f32 %v1763_v23, %v4793_v16  ;;  %v2031_v2 = vpack.c.bf16 %v1933_v47, %v1931_v8  ;;  %v2034_v53 = vpack.c.bf16 %v1937_v17, %v1935_v38  ;;  %2483 = vmatprep.subr.bf16.mxu0 %v3920_v7  ;;  %v2032_v50 = vpack.c.bf16 %v1985_v21, %v4902_v22 }
 0x368   : > { %v1987_v11 = vsel %vm798_vm5, %v1984_v48, %v1986_v60  ;;  %v1989_v30 = vsel %vm798_vm5, %v1986_v60, %v4572_v51 }
 0x369   : > { %2412 = vmatprep.mubr.bf16.mxu0 %v2031_v2  ;;  %v2035_v27 = vpack.c.bf16 %v1989_v30, %v1987_v11 }
 0x36a   : > { %2413 = vmatmul.mubr.bf16.gmra.mrb[64].mxu0 %v2030_v59 }
 0x36b   : > { %v1767_v18 = vpop.f32.mrb[40].mxu0  ;;  %2422 = vmatprep.mubr.bf16.mxu0 %v2034_v53  ;;  %2484 = vmatpush1.bf16.msra.mxu0 %v3918_v58 }
 0x36c   : > { %v1769_v63 = vpop.f32.mrb[41].mxu0  ;;  %2485 = vmatprep.subr.bf16.mxu0 %v3923_v54 }
 0x36d   : > { %v4923_v8 = vadd.f32 %v1769_v63, %v4793_v16  ;;  %v1771_v25 = vpop.f32.mrb[42].mxu0 }
 0x36e   : > { %v1773_v22 = vpop.f32.mrb[43].mxu0 }
 0x36f   : > { %v4926_v20 = vadd.f32 %v1773_v22, %v4793_v16  ;;  %2486 = vmatpush1.bf16.msra.mxu0 %v3921_v36 }
 0x370   : > { %3520 = vmatprep.subr.bf16.mxu0 %v4251_v0 }
 0x372   : > { %2423 = vmatmul.mubr.bf16.gmra.mrb[68].mxu0 %v2033_v9 }
 0x373   : > { %v1777_v51 = vpop.f32.mrb[44].mxu0  ;;  %2432 = vmatprep.mubr.bf16.mxu0 %v4603_v44 }
 0x374   : > { %v1779_v59 = vpop.f32.mrb[45].mxu0 }
 0x375   : > { %v4931_v19 = vadd.f32 %v1779_v59, %v4793_v16  ;;  %v1781_v24 = vpop.f32.mrb[46].mxu0 }
 0x376   : > { %v1783_v28 = vpop.f32.mrb[47].mxu0 }
 0x377   : > { %v4934_v7 = vadd.f32 %v1783_v28, %v4793_v16 }
 0x37a   : > { %2433 = vmatmul.mubr.bf16.gmra.mrb[72].mxu0 %v4609_v40 }
 0x37b   : > { %v1787_v37 = vpop.f32.mrb[48].mxu0  ;;  %2442 = vmatprep.mubr.bf16.mxu0 %v4603_v44 }
 0x37c   : > { %v1789_v43 = vpop.f32.mrb[49].mxu0 }
 0x37d   : > { %v4939_v35 = vadd.f32 %v1789_v43, %v4793_v16  ;;  %v1791_v9 = vpop.f32.mrb[50].mxu0  ;;  %v3931_v16 = vld [vmem:[%s5174_s5 + $0xf0] ss:$8 sps:$4 sm:$0xff]  }
 0x37e   : > { %v1792_v48 = vpop.f32.mrb[51].mxu0 }
 0x382   : > { %2443 = vmatmul.mubr.bf16.gmra.mrb[76].mxu0 %v4609_v40 }
 0x383   : > { %2452 = vmatprep.mubr.bf16.mxu0 %v4603_v44  ;;  %v3925_v44 = vld [vmem:[%s5174_s5 + $0x90] ss:$8 sps:$4 sm:$0xff]  }
 0x384   : > { %3490 = vmatprep.subr.bf16.mxu1 %v3925_v44 }
 0x385   : > { %3491 = vmatpush3.bf16.msra.mxu1 %v3925_v44 }
 0x38a   : > { %2453 = vmatmul.mubr.bf16.gmra.mrb[80].mxu0 %v4609_v40 }
 0x38b   : > { %2462 = vmatprep.mubr.bf16.mxu0 %v4619_v49  ;;  %v3928_v49 = vld [vmem:[%s5174_s5 + $0xc0] ss:$8 sps:$4 sm:$0xff]  }
 0x392   : > { %2463 = vmatmul.mubr.bf16.gmra.mrb[84].mxu0 %v4609_v40  ;;  %v3926_v40 = vld [vmem:[%s5174_s5 + $0xa0] ss:$8 sps:$4 sm:$0xff]  }
 0x393   : > { %2503 = vmatprep.mubr.bf16.mxu0 %v4253_v62  ;;  %3492 = vmatprep.subr.bf16.mxu1 %v3926_v40 }
 0x394   : > { %3493 = vmatpush3.bf16.msra.mxu1 %v3926_v40 }
 0x39a   : > { %2504 = vmatmul.mubr.bf16.vlgmr.msra.gmra.mrb[52].mxu0 %v2023_v15  ;;  %v4998_v15 = vrot.slane %v3316_v56, %v4706_v31 }
 0x39b   : > { %2513 = vmatprep.mubr.bf16.mxu0 %v4253_v62 }
 0x3a2   : > { %2514 = vmatmul.mubr.bf16.gmra.mrb[56].mxu0 %v2026_v45 }
 0x3a3   : > { %2523 = vmatprep.mubr.bf16.mxu0 %v4253_v62 }
 0x3aa   : > { %2524 = vmatmul.mubr.bf16.gmra.mrb[60].mxu0 %v2029_v32 }
 0x3ab   : > { %2533 = vmatprep.mubr.bf16.mxu0 %v4253_v62 }
 0x3b2   : > { %2534 = vmatmul.mubr.bf16.gmra.mrb[64].mxu0 %v2032_v50 }
 0x3b3   : > { %2543 = vmatprep.mubr.bf16.mxu0 %v4253_v62 }
 0x3ba   : > { %2544 = vmatmul.mubr.bf16.gmra.mrb[68].mxu0 %v2035_v27 }
 0x3bb   : > { %2553 = vmatprep.mubr.bf16.mxu0 %v4253_v62 }
 0x3c2   : > { %2554 = vmatmul.mubr.bf16.gmra.mrb[72].mxu0 %v4638_v26 }
 0x3c3   : > { %2563 = vmatprep.mubr.bf16.mxu0 %v4253_v62 }
 0x3ca   : > { %2564 = vmatmul.mubr.bf16.gmra.mrb[76].mxu0 %v4638_v26 }
 0x3cb   : > { %2573 = vmatprep.mubr.bf16.mxu0 %v4253_v62 }
 0x3d2   : > { %2574 = vmatmul.mubr.bf16.gmra.mrb[80].mxu0 %v4638_v26  ;;  %v3929_v26 = vld [vmem:[%s5174_s5 + $0xd0] ss:$8 sps:$4 sm:$0xff]  }
 0x3d3   : > { %2583 = vmatprep.mubr.bf16.mxu0 %v4253_v62  ;;  %v3927_v62 = vld [vmem:[%s5174_s5 + $0xb0] ss:$8 sps:$4 sm:$0xff]  }
 0x3d4   : > { %3494 = vmatprep.subr.bf16.mxu1 %v3927_v62 }
 0x3d5   : > { %3495 = vmatpush3.bf16.msra.mxu1 %v3927_v62 }
 0x3d6   : > { %3496 = vmatprep.subr.bf16.mxu1 %v3928_v49 }
 0x3d9   : > { %3497 = vmatpush3.bf16.msra.mxu1 %v3928_v49 }
 0x3da   : > { %2584 = vmatmul.mubr.bf16.gmra.mrb[84].mxu0 %v4648_v57  ;;  %3498 = vmatprep.subr.bf16.mxu1 %v3929_v26  ;;  %v3930_v57 = vld [vmem:[%s5174_s5 + $0xe0] ss:$8 sps:$4 sm:$0xff]  }
 0x3db   : > { %3536 = vmatprep.mubr.msk.bf16.mxu0 %vm4252_vm0, %v4251_v0 }
 0x3dd   : > { %3499 = vmatpush3.bf16.msra.mxu1 %v3929_v26 }
 0x3de   : > { %3500 = vmatprep.subr.bf16.mxu1 %v3930_v57 }
 0x3e1   : > { %3501 = vmatpush3.bf16.msra.mxu1 %v3930_v57 }
 0x3e2   : > { %3502 = vmatprep.subr.bf16.mxu1 %v3931_v16 }
 0x3e5   : > { %3503 = vmatpush3.bf16.msra.mxu1 %v3931_v16 }
 0x46d   : > { %v2505_v10 = vpop.f32.mrb[52].mxu0 }
 0x46e   : > { %v3576_v12 = vadd.f32 %v2505_v10, %v4995_v42  ;;  %v2507_v45 = vpop.f32.mrb[53].mxu0 }
 0x46f   : > { %v3577_v29 = vadd.f32 %v2507_v45, %v4998_v15  ;;  %v2509_v14 = vpop.f32.mrb[54].mxu0 }
 0x470   : > { %v3578_v32 = vadd.f32 %v2509_v14, %v4995_v42  ;;  %v2511_v41 = vpop.f32.mrb[55].mxu0 }
 0x471   : > { %v3369_v60 = vmul.f32 -1.442695, %v3577_v29  ;;  %v3579_v23 = vadd.f32 %v2511_v41, %v4998_v15 }
 0x473   : > { %4034 = vpow2.f32 %v3369_v60  ;;  %v3370_v47 = vmul.f32 -1.442695, %v3579_v23 }
 0x475   : > { %4036 = vpow2.f32 %v3370_v47  ;;  %v2515_v38 = vpop.f32.mrb[56].mxu0 }
 0x476   : > { %v3580_v31 = vadd.f32 %v2515_v38, %v4995_v42  ;;  %v2517_v17 = vpop.f32.mrb[57].mxu0 }
 0x477   : > { %v3581_v21 = vadd.f32 %v2517_v17, %v4998_v15  ;;  %v2519_v2 = vpop.f32.mrb[58].mxu0 }
 0x478   : > { %v3582_v53 = vadd.f32 %v2519_v2, %v4995_v42  ;;  %v2521_v58 = vpop.f32.mrb[59].mxu0 }
 0x479   : > { %v3371_v50 = vmul.f32 -1.442695, %v3581_v21  ;;  %v3583_v54 = vadd.f32 %v2521_v58, %v4998_v15 }
 0x47b   : > { %4038 = vpow2.f32 %v3371_v50  ;;  %v3372_v11 = vmul.f32 -1.442695, %v3583_v54 }
 0x47d   : > { %v4035_v30 = vpop.eup %4034  ;;  %4040 = vpow2.f32 %v3372_v11  ;;  %v2525_v27 = vpop.f32.mrb[60].mxu0 }
 0x47e   : > { %v2660_v18 = vadd.f32 1.0, %v4035_v30  ;;  %v3584_v36 = vadd.f32 %v2525_v27, %v4995_v42  ;;  %v2527_v63 = vpop.f32.mrb[61].mxu0  ;;  %4042 = vtanh.f32 %v3576_v12 }
 0x47f   : > { %v4037_v25 = vpop.eup %4036  ;;  %v3585_v22 = vadd.f32 %v2527_v63, %v4998_v15  ;;  %v2529_v51 = vpop.f32.mrb[62].mxu0 }
 0x480   : > { %4044 = vrcp.f32 %v2660_v18  ;;  %v2661_v59 = vadd.f32 1.0, %v4037_v25  ;;  %v3586_v24 = vadd.f32 %v2529_v51, %v4995_v42  ;;  %v2531_v28 = vpop.f32.mrb[63].mxu0 }
 0x481   : > { %4046 = vtanh.f32 %v3578_v32  ;;  %v3373_v37 = vmul.f32 -1.442695, %v3585_v22  ;;  %v3587_v43 = vadd.f32 %v2531_v28, %v4998_v15 }
 0x482   : > { %4048 = vrcp.f32 %v2661_v59 }
 0x483   : > { %4050 = vpow2.f32 %v3373_v37  ;;  %v3374_v9 = vmul.f32 -1.442695, %v3587_v43 }
 0x485   : > { %v4039_v48 = vpop.eup %4038  ;;  %4052 = vpow2.f32 %v3374_v9  ;;  %v2535_v44 = vpop.f32.mrb[64].mxu0 }
 0x486   : > { %v2662_v40 = vadd.f32 1.0, %v4039_v48  ;;  %v3588_v62 = vadd.f32 %v2535_v44, %v4995_v42  ;;  %v2537_v49 = vpop.f32.mrb[65].mxu0  ;;  %4054 = vtanh.f32 %v3580_v31 }
 0x487   : > { %v4041_v26 = vpop.eup %4040  ;;  %v3589_v57 = vadd.f32 %v2537_v49, %v4998_v15  ;;  %v2539_v16 = vpop.f32.mrb[66].mxu0 }
 0x488   : > { %4056 = vrcp.f32 %v2662_v40  ;;  %v2663_v56 = vadd.f32 1.0, %v4041_v26  ;;  %v3590_v10 = vadd.f32 %v2539_v16, %v4995_v42  ;;  %v2541_v12 = vpop.f32.mrb[67].mxu0  ;;  %v4043_v45 = vpop.eup %4042 }
 0x489   : > { %4058 = vtanh.f32 %v3582_v53  ;;  %v3375_v29 = vmul.f32 -1.442695, %v3589_v57  ;;  %v3591_v14 = vadd.f32 %v2541_v12, %v4998_v15 }
 0x48a   : > { %v4045_v32 = vpop.eup %4044  ;;  %4060 = vrcp.f32 %v2663_v56 }
 0x48b   : > { %v4047_v41 = vpop.eup %4046  ;;  %4062 = vpow2.f32 %v3375_v29  ;;  %v3376_v60 = vmul.f32 -1.442695, %v3591_v14  ;;  %v2711_v23 = vmul.f32 %v4045_v32, %v4043_v45 }
 0x48c   : > { %v4049_v47 = vpop.eup %4048 }
 0x48d   : > { %v4051_v38 = vpop.eup %4050  ;;  %4064 = vpow2.f32 %v3376_v60  ;;  %v2545_v31 = vpop.f32.mrb[68].mxu0  ;;  %v2712_v17 = vmul.f32 %v4049_v47, %v4047_v41 }
 0x48e   : > { %v2664_v21 = vadd.f32 1.0, %v4051_v38  ;;  %v3592_v2 = vadd.f32 %v2545_v31, %v4995_v42  ;;  %v2547_v58 = vpop.f32.mrb[69].mxu0  ;;  %4066 = vtanh.f32 %v3584_v36 }
 0x48f   : > { %v4053_v50 = vpop.eup %4052  ;;  %v3593_v53 = vadd.f32 %v2547_v58, %v4998_v15  ;;  %v2549_v54 = vpop.f32.mrb[70].mxu0  ;;  %v2728_v11 = vpack.c.bf16 %v2712_v17, %v2711_v23 }
 0x490   : > { %4068 = vrcp.f32 %v2664_v21  ;;  %v2665_v30 = vadd.f32 1.0, %v4053_v50  ;;  %v3594_v27 = vadd.f32 %v2549_v54, %v4995_v42  ;;  %v2551_v18 = vpop.f32.mrb[71].mxu0  ;;  %v4055_v63 = vpop.eup %4054 }
 0x491   : > { %4070 = vtanh.f32 %v3586_v24  ;;  %v3377_v25 = vmul.f32 -1.442695, %v3593_v53  ;;  %v3595_v22 = vadd.f32 %v2551_v18, %v4998_v15 }
 0x492   : > { %v4057_v51 = vpop.eup %4056  ;;  %4072 = vrcp.f32 %v2665_v30 }
 0x493   : > { %v4059_v59 = vpop.eup %4058  ;;  %4074 = vpow2.f32 %v3377_v25  ;;  %v3378_v28 = vmul.f32 -1.442695, %v3595_v22  ;;  %v2713_v36 = vmul.f32 %v4057_v51, %v4055_v63 }
 0x494   : > { %v4061_v37 = vpop.eup %4060 }
 0x495   : > { %v4063_v43 = vpop.eup %4062  ;;  %4076 = vpow2.f32 %v3378_v28  ;;  %v2555_v9 = vpop.f32.mrb[72].mxu0  ;;  %v2714_v48 = vmul.f32 %v4061_v37, %v4059_v59 }
 0x496   : > { %4078 = vtanh.f32 %v3588_v62  ;;  %v2666_v44 = vadd.f32 1.0, %v4063_v43  ;;  %v3596_v40 = vadd.f32 %v2555_v9, %v4995_v42  ;;  %v2557_v49 = vpop.f32.mrb[73].mxu0  ;;  %v2772_v62 = vrot.slane %v2728_v11, 2 }
 0x497   : > { %v4065_v24 = vpop.eup %4064  ;;  %4080 = vtanh.f32 %v3590_v10  ;;  %v3597_v26 = vadd.f32 %v2557_v49, %v4998_v15  ;;  %v2559_v57 = vpop.f32.mrb[74].mxu0  ;;  %v2729_v16 = vpack.c.bf16 %v2714_v48, %v2713_v36 }
 0x498   : > { %4082 = vrcp.f32 %v2666_v44  ;;  %v2667_v56 = vadd.f32 1.0, %v4065_v24  ;;  %v3598_v12 = vadd.f32 %v2559_v57, %v4995_v42  ;;  %v2561_v45 = vpop.f32.mrb[75].mxu0  ;;  %v4067_v29 = vpop.eup %4066 }
 0x499   : > { %v3379_v14 = vmul.f32 -1.442695, %v3597_v26  ;;  %v3599_v32 = vadd.f32 %v2561_v45, %v4998_v15  ;;  %v2773_v41 = vrot.slane %v2729_v16, 2 }
 0x49a   : > { %v4069_v60 = vpop.eup %4068  ;;  %4084 = vrcp.f32 %v2667_v56 }
 0x49b   : > { %v4071_v23 = vpop.eup %4070  ;;  %4086 = vpow2.f32 %v3379_v14  ;;  %v3380_v10 = vmul.f32 -1.442695, %v3599_v32  ;;  %v2774_v47 = vsel %vm798_vm5, %v2772_v62, %v2773_v41  ;;  %v2715_v38 = vmul.f32 %v4069_v60, %v4067_v29 }
 0x49c   : > { %v4073_v31 = vpop.eup %4072  ;;  %3504 = vmatprep.mubr.bf16.mxu1 %v2774_v47 }
 0x49d   : > { %v4075_v17 = vpop.eup %4074  ;;  %4088 = vpow2.f32 %v3380_v10  ;;  %v2565_v21 = vpop.f32.mrb[76].mxu0  ;;  %v2716_v58 = vmul.f32 %v4073_v31, %v4071_v23 }
 0x49e   : > { %v2668_v50 = vadd.f32 1.0, %v4075_v17  ;;  %v3600_v53 = vadd.f32 %v2565_v21, %v4995_v42  ;;  %v2567_v54 = vpop.f32.mrb[77].mxu0  ;;  %4090 = vtanh.f32 %v3592_v2 }
 0x49f   : > { %v4077_v11 = vpop.eup %4076  ;;  %v3601_v30 = vadd.f32 %v2567_v54, %v4998_v15  ;;  %v2569_v18 = vpop.f32.mrb[78].mxu0  ;;  %v2730_v63 = vpack.c.bf16 %v2716_v58, %v2715_v38 }
 0x4a0   : > { %v4079_v25 = vpop.eup %4078  ;;  %4092 = vrcp.f32 %v2668_v50  ;;  %v2669_v22 = vadd.f32 1.0, %v4077_v11  ;;  %v3602_v51 = vadd.f32 %v2569_v18, %v4995_v42  ;;  %v2571_v59 = vpop.f32.mrb[79].mxu0 }
 0x4a1   : > { %v4081_v28 = vpop.eup %4080  ;;  %4094 = vtanh.f32 %v3594_v27  ;;  %v3381_v36 = vmul.f32 -1.442695, %v3601_v30  ;;  %v3603_v37 = vadd.f32 %v2571_v59, %v4998_v15  ;;  %v2775_v43 = vrot.slane %v2730_v63, 2 }
 0x4a2   : > { %v4083_v9 = vpop.eup %4082  ;;  %4096 = vrcp.f32 %v2669_v22 }
 0x4a3   : > { %4098 = vpow2.f32 %v3381_v36  ;;  %v3382_v2 = vmul.f32 -1.442695, %v3603_v37  ;;  %v2776_v48 = vsel %vm798_vm5, %v2773_v41, %v2775_v43  ;;  %v2717_v44 = vmul.f32 %v4083_v9, %v4079_v25 }
 0x4a4   : > { %v4085_v49 = vpop.eup %4084  ;;  %3505 = vmatmul.mubr.bf16.vlgmr.msra.gmra.mrb[56].mxu1 %v2776_v48 }
 0x4a5   : > { %v4087_v24 = vpop.eup %4086  ;;  %4100 = vpow2.f32 %v3382_v2  ;;  %v2575_v26 = vpop.f32.mrb[80].mxu0  ;;  %v2718_v57 = vmul.f32 %v4085_v49, %v4081_v28 }
 0x4a6   : > { %v2670_v16 = vadd.f32 1.0, %v4087_v24  ;;  %v3604_v27 = vadd.f32 %v2575_v26, %v4995_v42  ;;  %v2577_v56 = vpop.f32.mrb[81].mxu0  ;;  %4102 = vtanh.f32 %v3596_v40 }
 0x4a7   : > { %v4089_v45 = vpop.eup %4088  ;;  %v3605_v29 = vadd.f32 %v2577_v56, %v4998_v15  ;;  %v2579_v14 = vpop.f32.mrb[82].mxu0  ;;  %v2731_v32 = vpack.c.bf16 %v2718_v57, %v2717_v44 }
 0x4a8   : > { %4104 = vrcp.f32 %v2670_v16  ;;  %v2671_v62 = vadd.f32 1.0, %v4089_v45  ;;  %v3606_v41 = vadd.f32 %v2579_v14, %v4995_v42  ;;  %v2581_v60 = vpop.f32.mrb[83].mxu0  ;;  %v4091_v23 = vpop.eup %4090 }
 0x4a9   : > { %4106 = vtanh.f32 %v3598_v12  ;;  %v3383_v10 = vmul.f32 -1.442695, %v3605_v29  ;;  %v3607_v47 = vadd.f32 %v2581_v60, %v4998_v15  ;;  %v2777_v38 = vrot.slane %v2731_v32, 2 }
 0x4aa   : > { %v4093_v31 = vpop.eup %4092  ;;  %4108 = vrcp.f32 %v2671_v62 }
 0x4ab   : > { %v4095_v17 = vpop.eup %4094  ;;  %4110 = vpow2.f32 %v3383_v10  ;;  %v3384_v40 = vmul.f32 -1.442695, %v3607_v47  ;;  %v2778_v21 = vsel %vm798_vm5, %v2775_v43, %v2777_v38  ;;  %v2719_v58 = vmul.f32 %v4093_v31, %v4091_v23 }
 0x4ac   : > { %v4097_v50 = vpop.eup %4096  ;;  %3508 = vmatprep.mubr.bf16.mxu1 %v2778_v21 }
 0x4ad   : > { %v4099_v54 = vpop.eup %4098  ;;  %4112 = vpow2.f32 %v3384_v40  ;;  %v2585_v11 = vpop.f32.mrb[84].mxu0  ;;  %v2720_v30 = vmul.f32 %v4097_v50, %v4095_v17 }
 0x4ae   : > { %v2672_v18 = vadd.f32 1.0, %v4099_v54  ;;  %v3608_v12 = vadd.f32 %v2585_v11, %v4995_v42  ;;  %v2587_v63 = vpop.f32.mrb[85].mxu0  ;;  %4114 = vtanh.f32 %v3600_v53 }
 0x4af   : > { %v4101_v25 = vpop.eup %4100  ;;  %v3609_v22 = vadd.f32 %v2587_v63, %v4998_v15  ;;  %v2589_v59 = vpop.f32.mrb[86].mxu0  ;;  %v2732_v28 = vpack.c.bf16 %v2720_v30, %v2719_v58 }
 0x4b0   : > { %4116 = vrcp.f32 %v2672_v18  ;;  %v2673_v36 = vadd.f32 1.0, %v4101_v25  ;;  %v2590_v37 = vpop.f32.mrb[87].mxu0  ;;  %v4103_v43 = vpop.eup %4102 }
 0x4b1   : > { %4118 = vtanh.f32 %v3602_v51  ;;  %v3385_v9 = vmul.f32 -1.442695, %v3609_v22  ;;  %v2779_v2 = vrot.slane %v2732_v28, 2  ;;  %v3034_v28 = vld [vmem:[%s5177_s8] sm:$0xf] }
 0x4b2   : > { %v4105_v48 = vpop.eup %4104  ;;  %4120 = vrcp.f32 %v2673_v36  ;;  %3037 = vperm.xlu0 %3755, %v3034_v28   ;;  %v3402_v36 = vld [vmem:[%s5175_s6 + $0x2] sm:$0x3] }
 0x4b3   : > { %v4107_v44 = vpop.eup %4106  ;;  %4122 = vpow2.f32 %v3385_v9  ;;  %v2780_v42 = vsel %vm798_vm5, %v2777_v38, %v2779_v2  ;;  %v2721_v49 = vmul.f32 %v4105_v48, %v4103_v43  ;;  %v5049_v37 = vrot.slane %v3402_v36, %v4700_v5 }
 0x4b4   : > { %v4109_v24 = vpop.eup %4108  ;;  %3509 = vmatmul.mubr.bf16.gmra.mrb[60].mxu1 %v2780_v42  ;;  %4124 = vtanh.f32 %v3604_v27 }
 0x4b5   : > { %v4111_v53 = vpop.eup %4110  ;;  %v2722_v15 = vmul.f32 %v4109_v24, %v4107_v44 }
 0x4b6   : > { %v2674_v26 = vadd.f32 1.0, %v4111_v53 }
 0x4b7   : > { %v4113_v57 = vpop.eup %4112  ;;  %v2733_v16 = vpack.c.bf16 %v2722_v15, %v2721_v49 }
 0x4b8   : > { %4126 = vrcp.f32 %v2674_v26  ;;  %v2675_v56 = vadd.f32 1.0, %v4113_v57  ;;  %v4115_v51 = vpop.eup %4114 }
 0x4b9   : > { %4128 = vtanh.f32 %v3606_v41  ;;  %v2781_v45 = vrot.slane %v2733_v16, 2 }
 0x4ba   : > { %v4117_v29 = vpop.eup %4116  ;;  %4130 = vrcp.f32 %v2675_v56 }
 0x4bb   : > { %v4119_v14 = vpop.eup %4118  ;;  %v2782_v32 = vsel %vm798_vm5, %v2779_v2, %v2781_v45  ;;  %v2723_v62 = vmul.f32 %v4117_v29, %v4115_v51  ;;  %4132 = vtanh.f32 %v3608_v12 }
 0x4bc   : > { %v4121_v60 = vpop.eup %4120  ;;  %3512 = vmatprep.mubr.bf16.mxu1 %v2782_v32 }
 0x4bd   : > { %v4123_v23 = vpop.eup %4122  ;;  %v2724_v10 = vmul.f32 %v4121_v60, %v4119_v14 }
 0x4be   : > { %v2676_v47 = vadd.f32 1.0, %v4123_v23  ;;  %v4125_v27 = vpop.eup %4124 }
 0x4bf   : > { %v2734_v38 = vpack.c.bf16 %v2724_v10, %v2723_v62 }
 0x4c0   : > { %4134 = vrcp.f32 %v2676_v47 }
 0x4c1   : > { %v2783_v31 = vrot.slane %v2734_v38, 2 }
 0x4c2   : > { %v4127_v17 = vpop.eup %4126 }
 0x4c3   : > { %v4129_v40 = vpop.eup %4128  ;;  %v2784_v41 = vsel %vm798_vm5, %v2781_v45, %v2783_v31  ;;  %v2725_v21 = vmul.f32 %v4127_v17, %v4125_v27 }
 0x4c4   : > { %v4131_v58 = vpop.eup %4130  ;;  %3513 = vmatmul.mubr.bf16.gmra.mrb[64].mxu1 %v2784_v41 }
 0x4c5   : > { %v2726_v50 = vmul.f32 %v4131_v58, %v4129_v40  ;;  %v4133_v11 = vpop.eup %4132 }
 0x4c7   : > { %v2735_v54 = vpack.c.bf16 %v2726_v50, %v2725_v21 }
 0x4c9   : > { %v2785_v30 = vrot.slane %v2735_v54, 2 }
 0x4ca   : > { %v4135_v18 = vpop.eup %4134 }
 0x4cb   : > { %v2786_v63 = vsel %vm798_vm5, %v2783_v31, %v2785_v30  ;;  %v2727_v25 = vmul.f32 %v4135_v18, %v4133_v11 }
 0x4cc   : > { %3516 = vmatprep.mubr.bf16.mxu1 %v2786_v63 }
 0x4cd   : > { %v2736_v12 = vpack.c.bf16 %v2727_v25, %v2727_v25 }
 0x4cf   : > { %v2787_v22 = vrot.slane %v2736_v12, 2 }
 0x4d1   : > { %v2788_v59 = vsel %vm798_vm5, %v2785_v30, %v2787_v22 }
 0x4d2   : > { %3517 = vmatmul.mubr.bf16.gmra.mrb[68].mxu1 %v2788_v59 }
 0x577   : > { %v3506_v43 = vpop.f32.mrb[56].mxu1 }
 0x578   : > { %v2888_v9 = vadd.f32 %v3506_v43, %v5049_v37  ;;  %v2879_v2 = vpop.f32.mrb[57].mxu1 }
 0x579   : > { %v2880_v48 = vadd.f32 %v2879_v2, %v5049_v37  ;;  %v3507_v44 = vpop.f32.mrb[58].mxu1 }
 0x57a   : > { %v2891_v42 = vadd.f32 %v3507_v44, %v5049_v37  ;;  %v2882_v49 = vpop.f32.mrb[59].mxu1  ;;  %v2962_v15 = vrot.slane %v2888_v9, 4 }
 0x57b   : > { %v2959_v24 = vrot.slane %v2880_v48, 4  ;;  %v2883_v53 = vadd.f32 %v2882_v49, %v5049_v37 }
 0x57c   : > { %v2964_v26 = vrot.slane %v2891_v42, 4 }
 0x57d   : > { %v3007_v57 = vadd.f32 %v2959_v24, %v4797_v46  ;;  %v2960_v5 = vrot.slane %v2883_v53, 4 }
 0x57e   : > { %v2965_v16 = vsel %vm2958_vm11, %v2962_v15, %v2964_v26 }
 0x57f   : > { %v3010_v56 = vadd.f32 %v2965_v16, %v4816_v4  ;;  %v2961_v51 = vsel %vm2958_vm11, %v2959_v24, %v2960_v5  ;;  %v2963_v45 = vsel %vm2958_vm11, %v2960_v5, %v2962_v15 }
 0x580   : > { %v3008_v29 = vadd.f32 %v2961_v51, %v4802_v1  ;;  %v3009_v14 = vadd.f32 %v2963_v45, %v4811_v55 }
 0x582   : > { %v3025_v32 = vpack.c.bf16 %v3008_v29, %v3007_v57  ;;  %v3026_v62 = vpack.c.bf16 %v3010_v56, %v3009_v14 }
 0x584   : > { %v3049_v60 = vrot.slane %v3025_v32, 2  ;;  %v3050_v23 = vrot.slane %v3026_v62, 2 }
 0x586   : > { %v3051_v10 = vsel %vm798_vm5, %v3049_v60, %v3050_v23 }
 0x587   : > { %v3510_v46 = vpop.f32.mrb[60].mxu1  ;;  %3521 = vmatpush3.bf16.xpose.msra.mxu0 %v3051_v10 }
 0x588   : > { %v2904_v47 = vadd.f32 %v3510_v46, %v5049_v37  ;;  %v2895_v38 = vpop.f32.mrb[61].mxu1  ;;  %3522 = vmatprep.subr.bf16.mxu0 %v4251_v0 }
 0x589   : > { %v2896_v4 = vadd.f32 %v2895_v38, %v5049_v37  ;;  %v3511_v27 = vpop.f32.mrb[62].mxu1 }
 0x58a   : > { %v2907_v1 = vadd.f32 %v3511_v27, %v5049_v37  ;;  %v2898_v31 = vpop.f32.mrb[63].mxu1  ;;  %v2970_v40 = vrot.slane %v2904_v47, 4 }
 0x58b   : > { %v2966_v55 = vrot.slane %v2896_v4, 4  ;;  %v2899_v17 = vadd.f32 %v2898_v31, %v5049_v37 }
 0x58c   : > { %v2972_v41 = vrot.slane %v2907_v1, 4 }
 0x58d   : > { %v2967_v21 = vsel %vm2958_vm11, %v2964_v26, %v2966_v55  ;;  %v2968_v58 = vrot.slane %v2899_v17, 4 }
 0x58e   : > { %v3011_v50 = vadd.f32 %v2967_v21, %v4827_v13  ;;  %v2973_v54 = vsel %vm2958_vm11, %v2970_v40, %v2972_v41 }
 0x58f   : > { %v3014_v11 = vadd.f32 %v2973_v54, %v4865_v34  ;;  %v2969_v30 = vsel %vm2958_vm11, %v2966_v55, %v2968_v58  ;;  %v2971_v18 = vsel %vm2958_vm11, %v2968_v58, %v2970_v40 }
 0x590   : > { %v3012_v63 = vadd.f32 %v2969_v30, %v4836_v33  ;;  %v3013_v25 = vadd.f32 %v2971_v18, %v4855_v61 }
 0x592   : > { %v3027_v12 = vpack.c.bf16 %v3012_v63, %v3011_v50  ;;  %v3028_v22 = vpack.c.bf16 %v3014_v11, %v3013_v25 }
 0x594   : > { %v3052_v59 = vrot.slane %v3027_v12, 2  ;;  %v3054_v28 = vrot.slane %v3028_v22, 2 }
 0x596   : > { %v3053_v36 = vsel %vm798_vm5, %v3050_v23, %v3052_v59  ;;  %v3055_v13 = vsel %vm798_vm5, %v3052_v59, %v3054_v28 }
 0x597   : > { %v3514_v43 = vpop.f32.mrb[64].mxu1  ;;  %3523 = vmatpush3.bf16.xpose.msra.mxu0 %v3053_v36 }
 0x598   : > { %v2920_v34 = vadd.f32 %v3514_v43, %v5049_v37  ;;  %v2911_v9 = vpop.f32.mrb[65].mxu1  ;;  %3524 = vmatprep.subr.bf16.mxu0 %v4251_v0 }
 0x599   : > { %v2912_v2 = vadd.f32 %v2911_v9, %v5049_v37  ;;  %v3515_v33 = vpop.f32.mrb[66].mxu1 }
 0x59a   : > { %v2923_v61 = vadd.f32 %v3515_v33, %v5049_v37  ;;  %v2914_v48 = vpop.f32.mrb[67].mxu1  ;;  %v2978_v49 = vrot.slane %v2920_v34, 4 }
 0x59b   : > { %v2974_v44 = vrot.slane %v2912_v2, 4  ;;  %v2915_v42 = vadd.f32 %v2914_v48, %v5049_v37 }
 0x59c   : > { %v2980_v24 = vrot.slane %v2923_v61, 4 }
 0x59d   : > { %v2975_v53 = vsel %vm2958_vm11, %v2972_v41, %v2974_v44  ;;  %v2976_v15 = vrot.slane %v2915_v42, 4 }
 0x59e   : > { %v3015_v26 = vadd.f32 %v2975_v53, %v4885_v3  ;;  %v2981_v57 = vsel %vm2958_vm11, %v2978_v49, %v2980_v24 }
 0x59f   : > { %v3018_v5 = vadd.f32 %v2981_v57, %v4916_v52  ;;  %v2977_v16 = vsel %vm2958_vm11, %v2974_v44, %v2976_v15  ;;  %v2979_v56 = vsel %vm2958_vm11, %v2976_v15, %v2978_v49  ;;  %3525 = vmatpush3.bf16.xpose.msra.mxu0 %v3055_v13 }
 0x5a0   : > { %v3016_v51 = vadd.f32 %v2977_v16, %v4894_v6  ;;  %v3017_v45 = vadd.f32 %v2979_v56, %v4908_v39  ;;  %3526 = vmatprep.subr.bf16.mxu0 %v4251_v0 }
 0x5a2   : > { %v3029_v29 = vpack.c.bf16 %v3016_v51, %v3015_v26  ;;  %v3030_v14 = vpack.c.bf16 %v3018_v5, %v3017_v45 }
 0x5a4   : > { %v3056_v32 = vrot.slane %v3029_v29, 2  ;;  %v3058_v62 = vrot.slane %v3030_v14, 2 }
 0x5a5   : > { %v3518_v3 = vpop.f32.mrb[68].mxu1 }
 0x5a6   : > { %v2936_v60 = vadd.f32 %v3518_v3, %v5049_v37  ;;  %v2927_v23 = vpop.f32.mrb[69].mxu1  ;;  %v3057_v52 = vsel %vm798_vm5, %v3054_v28, %v3056_v32  ;;  %v3059_v10 = vsel %vm798_vm5, %v3056_v32, %v3058_v62 }
 0x5a7   : > { %v2928_v46 = vadd.f32 %v2927_v23, %v5049_v37  ;;  %v3519_v47 = vpop.f32.mrb[70].mxu1  ;;  %3527 = vmatpush3.bf16.xpose.msra.mxu0 %v3057_v52 }
 0x5a8   : > { %v2939_v6 = vadd.f32 %v3519_v47, %v5049_v37  ;;  %v2930_v39 = vpop.f32.mrb[71].mxu1  ;;  %3528 = vmatprep.subr.bf16.mxu0 %v4251_v0  ;;  %v2986_v27 = vrot.slane %v2936_v60, 4 }
 0x5a9   : > { %v2982_v38 = vrot.slane %v2928_v46, 4  ;;  %v2931_v4 = vadd.f32 %v2930_v39, %v5049_v37 }
 0x5aa   : > { %v2988_v1 = vrot.slane %v2939_v6, 4 }
 0x5ab   : > { %v2983_v31 = vsel %vm2958_vm11, %v2980_v24, %v2982_v38  ;;  %v2984_v55 = vrot.slane %v2931_v4, 4 }
 0x5ac   : > { %v3019_v17 = vadd.f32 %v2983_v31, %v4923_v8  ;;  %v2989_v40 = vsel %vm2958_vm11, %v2986_v27, %v2988_v1  ;;  %v3023_v41 = vadd.f32 %v2988_v1, %v4939_v35 }
 0x5ad   : > { %v3022_v21 = vadd.f32 %v2989_v40, %v4934_v7  ;;  %v2985_v58 = vsel %vm2958_vm11, %v2982_v38, %v2984_v55  ;;  %v2987_v50 = vsel %vm2958_vm11, %v2984_v55, %v2986_v27 }
 0x5ae   : > { %v3033_v54 = vpack.c.bf16 %v3023_v41, %v3023_v41  ;;  %v3020_v37 = vadd.f32 %v2985_v58, %v4926_v20  ;;  %v3021_v11 = vadd.f32 %v2987_v50, %v4931_v19  ;;  %v3024_v20 = vld [vmem:[%s5176_s7] sm:$0x3]  ;;  %v3038_v19 = vpop.permute.xlu0 %3037 }
 0x5af   : > { %3529 = vmatpush3.bf16.xpose.msra.mxu0 %v3059_v10 }
 0x5b0   : > { %3530 = vmatprep.subr.bf16.mxu0 %v4251_v0  ;;  %v3031_v8 = vpack.c.bf16 %v3020_v37, %v3019_v17  ;;  %v3032_v30 = vpack.c.bf16 %v3022_v21, %v3021_v11  ;;  %v3064_v18 = vrot.slane %v3033_v54, 2 }
 0x5b2   : > { %v3060_v35 = vrot.slane %v3031_v8, 2  ;;  %v3062_v63 = vrot.slane %v3032_v30, 2 }
 0x5b4   : > { %v3061_v7 = vsel %vm798_vm5, %v3058_v62, %v3060_v35  ;;  %v3063_v25 = vsel %vm798_vm5, %v3060_v35, %v3062_v63  ;;  %v3065_v12 = vsel %vm798_vm5, %v3062_v63, %v3064_v18 }
 0x5b7   : > { %3531 = vmatpush3.bf16.xpose.msra.mxu0 %v3061_v7 }
 0x5b8   : > { %3532 = vmatprep.subr.bf16.mxu0 %v4251_v0 }
 0x5bf   : > { %3533 = vmatpush3.bf16.xpose.msra.mxu0 %v3063_v25 }
 0x5c0   : > { %3534 = vmatprep.subr.bf16.mxu0 %v4251_v0 }
 0x5c7   : > { %3535 = vmatpush3.bf16.xpose.msra.mxu0 %v3065_v12 }
 0x5ce   : > { %3537 = vmatmul.mubr.bf16.vlgmr.msra.gmra.mrb[88].mxu0 %v3024_v20 }
 0x6a1   : > { %v3108_v22 = vpop.f32.mrb[88].mxu0 }
 0x6a2   : > { %v3538_v59 = vpop.f32.mrb[89].mxu0  ;;  %v3109_v28 = vadd.f32 %v3108_v22, %v3038_v19 }
 0x6a3   : > { %v3111_v0 = vpop.f32.mrb[90].mxu0 }
 0x6a4   : > { %3114 = vst [vmem:[%s354_s17] sm:$0xf] %v3109_v28  ;;  %v3539_v36 = vpop.f32.mrb[91].mxu0 }
 0x6a5   : > { %4177 = shalt.err (!%p4174_p6)
}
 0x6a6   : > { %s4178_s29 = scalar_lea.hbm %s5122_s27, 64  ;;  %s4182_s17 = scalar_lea.hbm %s5178_s9, 128 }
 0x6a7   : > { %p4179_p7 = scmp.ne.s32.totalorder %s5122_s27, %s4178_s29  ;;  %p4183_p0 = scmp.lt.u32.totalorder %s5122_s27, %s5178_s9 }
 0x6a8   : > { %p4184_p2 = scmp.lt.u32.totalorder %s4182_s17, %s4178_s29  ;;  %p4186_p8 = scmp.lt.u32.totalorder %s4178_s29, %s5122_s27 }
 0x6a9   : > { %p4180_p9 = pnand %p4179_p7, %p5194_p10 }
 0x6aa   : > { %p4185_p4 = por %p4184_p2, %p4183_p0 }
 0x6ab   : > { %p4181_p12 = pneg %p4180_p9 }
 0x6ac   : > { %p4187_p11 = por %p4186_p8, %p4185_p4 }
 0x6ae   : > { %p4188_p13 = pnand %p4187_p11, %p4181_p12 }
 0x6b0   : > { %4191 = shalt.err (!%p4188_p13)
}
 0x6b1   : > { %3687 = dma.vmem_to_hbm [thread:$0]  (%p5194_p10), %s5124_s23, 64, %s5122_s27, %s3116_s16  }
 0x6b2 PF: > { %p3699_p1 = scmp.ge.s32.totalorder %s4246_s14, 2  ;;  %s3142_s12 = sand.u32 1, %s4226_s30  }
 0x6b3   : > { %p5195_p3 = scmp.ne.s32.totalorder %s5186_s21, 0  ;;  %s3143_s20 = scalar_lea.sflag [#allocation4], %s3142_s12 }
 0x6b5   : > { %p3694_p5 = pnand %p3699_p1, %p5195_p3 }
 0x6b7   : > { %4221 = dma.done.wait (!%p3694_p5), %s3143_s20, 64  }
 0x6b8   : > { %4223 = vsyncadd (!%p3694_p5), %s3143_s20, 4294967232  ;;  %s23_s14 = sadd.s32 1, %s4246_s14   ;;  %s5196_s19 = sld [smem:[#allocation8_spill]] }
 0x6b9   : > { %p20_p6 = scmp.ge.s32.totalorder %s23_s14, 4   ;;  %s5197_s30 = smov %s4230_s10 }
 0x6ba   : > { %s5198_s10 = smov %s4234_s11  ;;  %s5199_s11 = smov %s4359_s22 }
 0x6bb   : > { %s5200_s12 = smov %s4242_s13  ;;  %22 = sbr.rel (!%p20_p6) target bundleno = 5 (0x5), region = 101 }
 0x6be   : > { %s5201_s13 = smov %s5196_s19 }
 0x6c2   :  { %3148 = vsyncpa [#allocation3], 1 }
 0x6c3   :  { %3150 = vsyncpa [#allocation3 + $0x1], 1 }
 0x6c4   :  { %3151 = vsyncpa [#allocation4], 1 }
 0x6c5   :  { %3153 = vsyncpa [#allocation4 + $0x1], 1 }

</bundles_post_ra>
